<compile_context>
chip_gen: v7x
topology: tpu7x:2x2x1
jax: 0.10.0
libtpu: 0.0.40
codegen_flags: <defaults>
</compile_context>

<pallas_src>
import functools

import jax
import jax.numpy as jnp
from jax.experimental import pallas as pl
from jax.experimental.pallas import tpu as pltpu


def basic_block_kernel(x_ref, w1_ref, s1_ref, b1_ref,
                       w2_ref, s2_ref, b2_ref, out_ref, acc_ref,
                       *, nb, h, compute_dtype):
    """NB images per grid step, lane-dense (rows, W*C) layout.

    x_ref   : (nb*h, W*Cin)    unpadded input rows (f32; also the residual)
    w1_ref  : (3, W*Cin, W*Cmid)  banded conv1 weights, one slab per kh tap,
                                  already in compute_dtype
    s1/b1   : (1, W*Cmid)      folded BN1 scale / bias (f32), lane-tiled over W
    w2_ref  : (3, W*Cmid, W*Cout) banded conv2 weights (compute_dtype)
    s2/b2   : (1, W*Cout)      folded BN2 scale / bias (f32)
    out_ref : (nb*h, W*Cout)   output rows (also conv2's tap accumulator)
    acc_ref : (nb*h, W*Cmid)   conv1 tap accumulator (f32)
    """
    m = nb * h
    x = x_ref[...]                          # (m, W*Cin) f32, aligned, lane-dense
    xm = x.astype(compute_dtype)            # MXU operand (weights pre-cast)

    # Row-shift masks implementing the H zero-padding of each image:
    # output row r takes the kh=0 tap from row r-1 unless r is an image's first
    # row, and the kh=2 tap from row r+1 unless r is an image's last row.
    # Hoisted once (reused by both convs).
    src = jax.lax.broadcasted_iota(jnp.int32, (m - 1, 1), 0)      # 0 .. m-2
    keep_prev = ((src + 1) % h) != 0          # dest row (src+1) not image row 0
    keep_next = (src % h) != (h - 1)          # dest row (src)  not image row h-1

    def conv3x3(lhs, w_ref, acc):
        # Three full-M MXU matmuls (one per kh tap), issued back-to-back with
        # no interleaved VPU work; the W taps / W-padding live in the band
        # structure of the weights.  Tap results are then combined across
        # shifted rows in the f32 accumulator ref.
        a0 = jnp.dot(lhs, w_ref[0], preferred_element_type=jnp.float32)
        a1 = jnp.dot(lhs, w_ref[1], preferred_element_type=jnp.float32)
        a2 = jnp.dot(lhs, w_ref[2], preferred_element_type=jnp.float32)
        acc[...] = a1
        acc[1:, :] = acc[1:, :] + jnp.where(keep_prev, a0[:m - 1, :], 0.0)
        acc[:m - 1, :] = acc[:m - 1, :] + jnp.where(keep_next, a2[1:, :], 0.0)
        return acc[...]

    # ---- conv1 -> bn1 (folded, lane-tiled) -> relu (all f32) ----
    c1 = conv3x3(xm, w1_ref, acc_ref)                     # (m, W*Cmid) f32
    y1 = jnp.maximum(c1 * s1_ref[...] + b1_ref[...], 0.0)

    # ---- conv2 -> bn2 (folded) -> + identity residual -> relu ----
    ym = y1.astype(compute_dtype)
    c2 = conv3x3(ym, w2_ref, out_ref)                     # (m, W*Cout) f32
    out_ref[...] = jnp.maximum(c2 * s2_ref[...] + b2_ref[...] + x, 0.0)


def _fold_bn(bn, eps):
    g, b, rm, rv = bn
    s = g / jnp.sqrt(rv + eps)
    return s.astype(jnp.float32), (b - rm * s).astype(jnp.float32)


def _banded_weights(w_oihw, W):
    """OIHW (Cout, Cin, 3, 3) -> (3, W*Cin, W*Cout) banded block weights.

    B[kh][wp*Cin+ci, w*Cout+co] = W[co, ci, kh, kw] with kw = wp - w + 1 when
    kw in {0,1,2}, else 0.  The zero band edges implement the W zero-padding.
    Built with a single einsum (no per-tap .at[].set loop at trace time).
    """
    Cout, Cin, KH, KW = w_oihw.shape
    w_hwio = jnp.transpose(w_oihw, (2, 3, 1, 0)).astype(jnp.float32)  # (KH,KW,Ci,Co)
    wp = jnp.arange(W)[:, None, None]
    wo = jnp.arange(W)[None, :, None]
    kw = jnp.arange(KW)[None, None, :]
    sel = (wp == wo + kw - (KW // 2)).astype(jnp.float32)             # (W, W, KW)
    band = jnp.einsum('pwk,hkio->hpiwo', sel, w_hwio)                 # (KH,W,Ci,W,Co)
    return band.reshape(KH, W * Cin, W * Cout)


def _pick_block_batch(n, h):
    """Largest per-step batch block with M = nb*h <= 256, preferring >= 2 grid
    steps (keeps both v7x TensorCores busy) as long as M stays >= 128."""
    best = 1
    for d in range(1, n + 1):
        if n % d == 0 and d * h <= 256:
            best = d
    if n // best < 2:
        for d in range(best - 1, 0, -1):
            if n % d == 0 and n // d >= 2 and d * h >= 128:
                return d
    return best


def basic_block_pallas(x_nchw, w1_oihw, bn1, w2_oihw, bn2, eps=1e-5,
                       compute_dtype=jnp.float32, block_batch=None):
    """x_nchw: (N, Cin, H, W).  bn* = (gamma, beta, running_mean, running_var).

    compute_dtype=jnp.bfloat16 is the MXU fast path on v5e/v6e/v7x (bf16
    operands, f32 accumulation; BN / ReLU / residual stay f32).
    """
    N, Cin, H, W = x_nchw.shape
    Cmid = w1_oihw.shape[0]
    Cout = w2_oihw.shape[0]
    assert Cout == Cin, "no downsample: residual requires inplanes == outplanes"
    wc_in, wc_mid, wc_out = W * Cin, W * Cmid, W * Cout
    # TODO(synk): generalize to W*C not a multiple of 128 (lane padding) and to
    # H not a multiple of 8; tile H with a halo for large spatial sizes.
    assert wc_in % 128 == 0 and wc_mid % 128 == 0 and wc_out % 128 == 0
    assert H % 8 == 0

    nb = _pick_block_batch(N, H) if block_batch is None else block_batch
    assert N % nb == 0
    m = nb * H

    # NCHW -> lane-dense rows (N*H, W*C), unpadded (H padding is handled by the
    # in-kernel tap masks; W padding by the band structure of the weights).
    x_rows = jnp.transpose(x_nchw, (0, 2, 3, 1)).astype(jnp.float32)
    x_rows = x_rows.reshape(N * H, wc_in)

    # Banded block weights, pre-cast to the MXU operand dtype in HBM.
    B1 = _banded_weights(w1_oihw, W).astype(compute_dtype)   # (3, W*Cin, W*Cmid)
    B2 = _banded_weights(w2_oihw, W).astype(compute_dtype)   # (3, W*Cmid, W*Cout)

    s1, b1 = _fold_bn(bn1, eps)
    s2, b2 = _fold_bn(bn2, eps)
    s1 = jnp.tile(s1, W).reshape(1, wc_mid)
    b1 = jnp.tile(b1, W).reshape(1, wc_mid)
    s2 = jnp.tile(s2, W).reshape(1, wc_out)
    b2 = jnp.tile(b2, W).reshape(1, wc_out)

    kernel = functools.partial(basic_block_kernel, nb=nb, h=H,
                               compute_dtype=compute_dtype)

    # MXU work of the banded formulation (zero-inflated by ~W/3 vs. the true
    # conv FLOPs — the dense band carries the zero blocks too).
    flops = 2 * 3 * (N * H) * (wc_in * wc_mid + wc_mid * wc_out)
    wsz = jnp.dtype(compute_dtype).itemsize
    bytes_accessed = (4 * x_rows.size + 4 * N * H * wc_out
                      + wsz * (B1.size + B2.size)
                      + 4 * 2 * (wc_mid + wc_out))

    out_rows = pl.pallas_call(
        kernel,
        out_shape=jax.ShapeDtypeStruct((N * H, wc_out), jnp.float32),
        grid=(N // nb,),
        in_specs=[
            pl.BlockSpec((m, wc_in), lambda n: (n, 0)),
            pl.BlockSpec((3, wc_in, wc_mid), lambda n: (0, 0, 0)),
            pl.BlockSpec((1, wc_mid), lambda n: (0, 0)),
            pl.BlockSpec((1, wc_mid), lambda n: (0, 0)),
            pl.BlockSpec((3, wc_mid, wc_out), lambda n: (0, 0, 0)),
            pl.BlockSpec((1, wc_out), lambda n: (0, 0)),
            pl.BlockSpec((1, wc_out), lambda n: (0, 0)),
        ],
        out_specs=pl.BlockSpec((m, wc_out), lambda n: (n, 0)),
        scratch_shapes=[pltpu.VMEM((m, wc_mid), jnp.float32)],
        compiler_params=pltpu.CompilerParams(
            dimension_semantics=("parallel",)),
        cost_estimate=pl.CostEstimate(flops=flops, transcendentals=0,
                                      bytes_accessed=bytes_accessed),
    )(x_rows, B1, s1, b1, B2, s2, b2)

    # lane-dense rows -> NCHW to match the PyTorch module's output convention.
    out_nhwc = out_rows.reshape(N, H, W, Cout)
    return jnp.transpose(out_nhwc, (0, 3, 1, 2))


def basic_block_ref(x_nchw, w1, bn1, w2, bn2, eps=1e-5):
    """Pure-JAX reference (lax conv) for verification."""
    def bn(y, p):
        g, b, rm, rv = (v.reshape(1, -1, 1, 1) for v in p)
        return (y - rm) / jnp.sqrt(rv + eps) * g + b

    dn = jax.lax.conv_dimension_numbers(x_nchw.shape, w1.shape,
                                        ('NCHW', 'OIHW', 'NCHW'))
    y = jax.lax.conv_general_dilated(x_nchw, w1, (1, 1), ((1, 1), (1, 1)),
                                     dimension_numbers=dn)
    y = jnp.maximum(bn(y, bn1), 0.0)
    y = jax.lax.conv_general_dilated(y, w2, (1, 1), ((1, 1), (1, 1)),
                                     dimension_numbers=dn)
    y = bn(y, bn2) + x_nchw
    return jnp.maximum(y, 0.0)


if __name__ == "__main__":
    # inplanes = planes = 8 (identity residual is valid), spatial 16x16 so
    # W*C = 128 (lane-dense); batch 16 so the batch-blocked grid is (2,) with
    # M = 8*16 = 128 rows per tap matmul.
    N, C, H, W = 16, 8, 16, 16
    key = jax.random.PRNGKey(0)
    kx, kw1, kw2, kg1, kb1, kg2, kb2, km1, kv1, km2, kv2 = jax.random.split(key, 11)

    x = jax.random.normal(kx, (N, C, H, W), jnp.float32)

    fan = C * 9
    w1 = jax.random.normal(kw1, (C, C, 3, 3), jnp.float32) * (2.0 / fan) ** 0.5
    w2 = jax.random.normal(kw2, (C, C, 3, 3), jnp.float32) * (2.0 / fan) ** 0.5

    bn1 = (1.0 + 0.1 * jax.random.normal(kg1, (C,), jnp.float32),
           0.1 * jax.random.normal(kb1, (C,), jnp.float32),
           0.1 * jax.random.normal(km1, (C,), jnp.float32),
           1.0 + 0.1 * jax.random.uniform(kv1, (C,), jnp.float32))
    bn2 = (1.0 + 0.1 * jax.random.normal(kg2, (C,), jnp.float32),
           0.1 * jax.random.normal(kb2, (C,), jnp.float32),
           0.1 * jax.random.normal(km2, (C,), jnp.float32),
           1.0 + 0.1 * jax.random.uniform(kv2, (C,), jnp.float32))

    ref = jax.block_until_ready(basic_block_ref(x, w1, bn1, w2, bn2))

    # f32-operand path (tight tolerance).
    out = jax.block_until_ready(basic_block_pallas(x, w1, bn1, w2, bn2))
    assert out.shape == (N, C, H, W)
    err = float(jnp.max(jnp.abs(out - ref)))
    assert err < 1e-3, err

    # bf16 MXU operands with f32 accumulation — fast path on v5e/v6e/v7x.
    # Loose sanity bound only (bf16 operand rounding over 72-term sums).
    out_bf16 = jax.block_until_ready(
        basic_block_pallas(x, w1, bn1, w2, bn2, compute_dtype=jnp.bfloat16))
    err_bf16 = float(jnp.max(jnp.abs(out_bf16 - ref)))
    assert err_bf16 < 1e-1, err_bf16

    print("KERNEL_OK")
</pallas_src>

<mosaic_0001>
module attributes {stable_mosaic.version = 11 : i64} {
  func.func @basic_block_kernel(%arg0: i32, %arg1: memref<128x128xf32, #tpu.memory_space<vmem>>, %arg2: memref<3x128x128xf32, #tpu.memory_space<vmem>>, %arg3: memref<1x128xf32, #tpu.memory_space<vmem>>, %arg4: memref<1x128xf32, #tpu.memory_space<vmem>>, %arg5: memref<3x128x128xf32, #tpu.memory_space<vmem>>, %arg6: memref<1x128xf32, #tpu.memory_space<vmem>>, %arg7: memref<1x128xf32, #tpu.memory_space<vmem>>, %arg8: memref<128x128xf32, #tpu.memory_space<vmem>>, %arg9: memref<128x128xf32, #tpu.memory_space<vmem>>) attributes {dimension_semantics = [#tpu.dimension_semantics<parallel>], iteration_bounds = array<i64: 2>, scalar_prefetch = 0 : i64, scratch_operands = 1 : i64, tpu.core_type = #tpu.core_type<tc>, window_params = [{transform_indices = @transform_0, window_bounds = array<i64: 128, 128>}, {pipeline_mode = #tpu.pipeline_mode<synchronous>, transform_indices = @transform_1, window_bounds = array<i64: 3, 128, 128>}, {pipeline_mode = #tpu.pipeline_mode<synchronous>, transform_indices = @transform_2, window_bounds = array<i64: 1, 128>}, {pipeline_mode = #tpu.pipeline_mode<synchronous>, transform_indices = @transform_3, window_bounds = array<i64: 1, 128>}, {pipeline_mode = #tpu.pipeline_mode<synchronous>, transform_indices = @transform_4, window_bounds = array<i64: 3, 128, 128>}, {pipeline_mode = #tpu.pipeline_mode<synchronous>, transform_indices = @transform_5, window_bounds = array<i64: 1, 128>}, {pipeline_mode = #tpu.pipeline_mode<synchronous>, transform_indices = @transform_6, window_bounds = array<i64: 1, 128>}, {transform_indices = @transform_7, window_bounds = array<i64: 128, 128>}]} {
    %c0 = arith.constant 0 : index
    %c0_0 = arith.constant 0 : index
    %0 = vector.load %arg1[%c0, %c0_0] : memref<128x128xf32, #tpu.memory_space<vmem>>, vector<128x128xf32>
    %1 = tpu.iota {dimensions = array<i32: 0>} : vector<127x1xi32>
    %c1_i32 = arith.constant 1 : i32
    %2 = vector.broadcast %c1_i32 : i32 to vector<127x1xi32>
    %3 = arith.addi %1, %2 : vector<127x1xi32>
    %c16_i32 = arith.constant 16 : i32
    %c0_i32 = arith.constant 0 : i32
    %4 = arith.cmpi eq, %c16_i32, %c0_i32 : i32
    %c1_i32_1 = arith.constant 1 : i32
    %5 = arith.select %4, %c1_i32_1, %c16_i32 : i32
    %6 = vector.broadcast %5 : i32 to vector<127x1xi32>
    %7 = arith.remsi %3, %6 : vector<127x1xi32>
    %c0_i32_2 = arith.constant 0 : i32
    %8 = vector.broadcast %c0_i32_2 : i32 to vector<127x1xi32>
    %9 = arith.cmpi ne, %7, %8 : vector<127x1xi32>
    %c0_i32_3 = arith.constant 0 : i32
    %10 = vector.broadcast %c0_i32_3 : i32 to vector<127x1xi32>
    %11 = arith.cmpi slt, %7, %10 : vector<127x1xi32>
    %c0_i32_4 = arith.constant 0 : i32
    %12 = arith.cmpi slt, %5, %c0_i32_4 : i32
    %13 = vector.broadcast %12 : i1 to vector<127x1xi1>
    %14 = vector.broadcast %13 : vector<127x1xi1> to vector<127x1xi1>
    %15 = arith.xori %11, %14 : vector<127x1xi1>
    %16 = arith.andi %15, %9 : vector<127x1xi1>
    %17 = vector.broadcast %5 : i32 to vector<127x1xi32>
    %18 = arith.addi %7, %17 : vector<127x1xi32>
    %19 = arith.select %16, %18, %7 : vector<127x1xi1>, vector<127x1xi32>
    %c0_i32_5 = arith.constant 0 : i32
    %20 = vector.broadcast %c0_i32_5 : i32 to vector<127x1xi32>
    %21 = arith.cmpi ne, %19, %20 : vector<127x1xi32>
    %c16_i32_6 = arith.constant 16 : i32
    %c0_i32_7 = arith.constant 0 : i32
    %22 = arith.cmpi eq, %c16_i32_6, %c0_i32_7 : i32
    %c1_i32_8 = arith.constant 1 : i32
    %23 = arith.select %22, %c1_i32_8, %c16_i32_6 : i32
    %24 = vector.broadcast %23 : i32 to vector<127x1xi32>
    %25 = arith.remsi %1, %24 : vector<127x1xi32>
    %c0_i32_9 = arith.constant 0 : i32
    %26 = vector.broadcast %c0_i32_9 : i32 to vector<127x1xi32>
    %27 = arith.cmpi ne, %25, %26 : vector<127x1xi32>
    %c0_i32_10 = arith.constant 0 : i32
    %28 = vector.broadcast %c0_i32_10 : i32 to vector<127x1xi32>
    %29 = arith.cmpi slt, %25, %28 : vector<127x1xi32>
    %c0_i32_11 = arith.constant 0 : i32
    %30 = arith.cmpi slt, %23, %c0_i32_11 : i32
    %31 = vector.broadcast %30 : i1 to vector<127x1xi1>
    %32 = vector.broadcast %31 : vector<127x1xi1> to vector<127x1xi1>
    %33 = arith.xori %29, %32 : vector<127x1xi1>
    %34 = arith.andi %33, %27 : vector<127x1xi1>
    %35 = vector.broadcast %23 : i32 to vector<127x1xi32>
    %36 = arith.addi %25, %35 : vector<127x1xi32>
    %37 = arith.select %34, %36, %25 : vector<127x1xi1>, vector<127x1xi32>
    %c15_i32 = arith.constant 15 : i32
    %38 = vector.broadcast %c15_i32 : i32 to vector<127x1xi32>
    %39 = arith.cmpi ne, %37, %38 : vector<127x1xi32>
    %c0_12 = arith.constant 0 : index
    %c0_13 = arith.constant 0 : index
    %c0_14 = arith.constant 0 : index
    %40 = vector.load %arg2[%c0_12, %c0_13, %c0_14] : memref<3x128x128xf32, #tpu.memory_space<vmem>>, vector<1x128x128xf32>
    %41 = vector.shape_cast %40 : vector<1x128x128xf32> to vector<128x128xf32>
    %cst = arith.constant dense<0.000000e+00> : vector<128x128xf32>
    %42 = tpu.matmul %0, %41, %cst {dimension_numbers = #tpu.dot_dimension_numbers<[1], [0], [0], [1], [0, 0, 1, 1], [], []>} : vector<128x128xf32>, vector<128x128xf32>, vector<128x128xf32> -> vector<128x128xf32>
    %c1 = arith.constant 1 : index
    %c0_15 = arith.constant 0 : index
    %c0_16 = arith.constant 0 : index
    %43 = vector.load %arg2[%c1, %c0_15, %c0_16] : memref<3x128x128xf32, #tpu.memory_space<vmem>>, vector<1x128x128xf32>
    %44 = vector.shape_cast %43 : vector<1x128x128xf32> to vector<128x128xf32>
    %cst_17 = arith.constant dense<0.000000e+00> : vector<128x128xf32>
    %45 = tpu.matmul %0, %44, %cst_17 {dimension_numbers = #tpu.dot_dimension_numbers<[1], [0], [0], [1], [0, 0, 1, 1], [], []>} : vector<128x128xf32>, vector<128x128xf32>, vector<128x128xf32> -> vector<128x128xf32>
    %c2 = arith.constant 2 : index
    %c0_18 = arith.constant 0 : index
    %c0_19 = arith.constant 0 : index
    %46 = vector.load %arg2[%c2, %c0_18, %c0_19] : memref<3x128x128xf32, #tpu.memory_space<vmem>>, vector<1x128x128xf32>
    %47 = vector.shape_cast %46 : vector<1x128x128xf32> to vector<128x128xf32>
    %cst_20 = arith.constant dense<0.000000e+00> : vector<128x128xf32>
    %48 = tpu.matmul %0, %47, %cst_20 {dimension_numbers = #tpu.dot_dimension_numbers<[1], [0], [0], [1], [0, 0, 1, 1], [], []>} : vector<128x128xf32>, vector<128x128xf32>, vector<128x128xf32> -> vector<128x128xf32>
    %c0_21 = arith.constant 0 : index
    %c0_22 = arith.constant 0 : index
    %49 = vector.load %arg9[%c0_21, %c0_22] : memref<128x128xf32, #tpu.memory_space<vmem>>, vector<128x128xf32>
    tpu.vector_store %arg9[%c0_21, %c0_22], %45 {strides = array<i32>} : memref<128x128xf32, #tpu.memory_space<vmem>>, vector<128x128xf32>,
    %c1_23 = arith.constant 1 : index
    %c0_24 = arith.constant 0 : index
    %50 = vector.load %arg9[%c1_23, %c0_24] : memref<128x128xf32, #tpu.memory_space<vmem>>, vector<127x128xf32>
    %51 = vector.extract_strided_slice %42 {offsets = [0, 0], sizes = [127, 128], strides = [1, 1]} : vector<128x128xf32> to vector<127x128xf32>
    %cst_25 = arith.constant 0.000000e+00 : f32
    %52 = vector.shape_cast %21 : vector<127x1xi1> to vector<127x1xi1>
    %53 = vector.broadcast %52 : vector<127x1xi1> to vector<127x128xi1>
    %54 = vector.broadcast %cst_25 : f32 to vector<127x128xf32>
    %55 = arith.select %53, %51, %54 : vector<127x128xi1>, vector<127x128xf32>
    %56 = arith.addf %50, %55 : vector<127x128xf32>
    %c1_26 = arith.constant 1 : index
    %c0_27 = arith.constant 0 : index
    %57 = vector.load %arg9[%c1_26, %c0_27] : memref<128x128xf32, #tpu.memory_space<vmem>>, vector<127x128xf32>
    tpu.vector_store %arg9[%c1_26, %c0_27], %56 {strides = array<i32>} : memref<128x128xf32, #tpu.memory_space<vmem>>, vector<127x128xf32>,
    %c0_28 = arith.constant 0 : index
    %c0_29 = arith.constant 0 : index
    %58 = vector.load %arg9[%c0_28, %c0_29] : memref<128x128xf32, #tpu.memory_space<vmem>>, vector<127x128xf32>
    %59 = vector.extract_strided_slice %48 {offsets = [1, 0], sizes = [127, 128], strides = [1, 1]} : vector<128x128xf32> to vector<127x128xf32>
    %cst_30 = arith.constant 0.000000e+00 : f32
    %60 = vector.shape_cast %39 : vector<127x1xi1> to vector<127x1xi1>
    %61 = vector.broadcast %60 : vector<127x1xi1> to vector<127x128xi1>
    %62 = vector.broadcast %cst_30 : f32 to vector<127x128xf32>
    %63 = arith.select %61, %59, %62 : vector<127x128xi1>, vector<127x128xf32>
    %64 = arith.addf %58, %63 : vector<127x128xf32>
    %c0_31 = arith.constant 0 : index
    %c0_32 = arith.constant 0 : index
    %65 = vector.load %arg9[%c0_31, %c0_32] : memref<128x128xf32, #tpu.memory_space<vmem>>, vector<127x128xf32>
    tpu.vector_store %arg9[%c0_31, %c0_32], %64 {strides = array<i32>} : memref<128x128xf32, #tpu.memory_space<vmem>>, vector<127x128xf32>,
    %c0_33 = arith.constant 0 : index
    %c0_34 = arith.constant 0 : index
    %66 = vector.load %arg9[%c0_33, %c0_34] : memref<128x128xf32, #tpu.memory_space<vmem>>, vector<128x128xf32>
    %c0_35 = arith.constant 0 : index
    %c0_36 = arith.constant 0 : index
    %67 = vector.load %arg3[%c0_35, %c0_36] : memref<1x128xf32, #tpu.memory_space<vmem>>, vector<1x128xf32>
    %68 = vector.broadcast %67 : vector<1x128xf32> to vector<128x128xf32>
    %69 = arith.mulf %66, %68 : vector<128x128xf32>
    %c0_37 = arith.constant 0 : index
    %c0_38 = arith.constant 0 : index
    %70 = vector.load %arg4[%c0_37, %c0_38] : memref<1x128xf32, #tpu.memory_space<vmem>>, vector<1x128xf32>
    %71 = vector.broadcast %70 : vector<1x128xf32> to vector<128x128xf32>
    %72 = arith.addf %69, %71 : vector<128x128xf32>
    %cst_39 = arith.constant 0.000000e+00 : f32
    %73 = vector.broadcast %cst_39 : f32 to vector<128x128xf32>
    %74 = arith.maximumf %72, %73 : vector<128x128xf32>
    %c0_40 = arith.constant 0 : index
    %c0_41 = arith.constant 0 : index
    %c0_42 = arith.constant 0 : index
    %75 = vector.load %arg5[%c0_40, %c0_41, %c0_42] : memref<3x128x128xf32, #tpu.memory_space<vmem>>, vector<1x128x128xf32>
    %76 = vector.shape_cast %75 : vector<1x128x128xf32> to vector<128x128xf32>
    %cst_43 = arith.constant dense<0.000000e+00> : vector<128x128xf32>
    %77 = tpu.matmul %74, %76, %cst_43 {dimension_numbers = #tpu.dot_dimension_numbers<[1], [0], [0], [1], [0, 0, 1, 1], [], []>} : vector<128x128xf32>, vector<128x128xf32>, vector<128x128xf32> -> vector<128x128xf32>
    %c1_44 = arith.constant 1 : index
    %c0_45 = arith.constant 0 : index
    %c0_46 = arith.constant 0 : index
    %78 = vector.load %arg5[%c1_44, %c0_45, %c0_46] : memref<3x128x128xf32, #tpu.memory_space<vmem>>, vector<1x128x128xf32>
    %79 = vector.shape_cast %78 : vector<1x128x128xf32> to vector<128x128xf32>
    %cst_47 = arith.constant dense<0.000000e+00> : vector<128x128xf32>
    %80 = tpu.matmul %74, %79, %cst_47 {dimension_numbers = #tpu.dot_dimension_numbers<[1], [0], [0], [1], [0, 0, 1, 1], [], []>} : vector<128x128xf32>, vector<128x128xf32>, vector<128x128xf32> -> vector<128x128xf32>
    %c2_48 = arith.constant 2 : index
    %c0_49 = arith.constant 0 : index
    %c0_50 = arith.constant 0 : index
    %81 = vector.load %arg5[%c2_48, %c0_49, %c0_50] : memref<3x128x128xf32, #tpu.memory_space<vmem>>, vector<1x128x128xf32>
    %82 = vector.shape_cast %81 : vector<1x128x128xf32> to vector<128x128xf32>
    %cst_51 = arith.constant dense<0.000000e+00> : vector<128x128xf32>
    %83 = tpu.matmul %74, %82, %cst_51 {dimension_numbers = #tpu.dot_dimension_numbers<[1], [0], [0], [1], [0, 0, 1, 1], [], []>} : vector<128x128xf32>, vector<128x128xf32>, vector<128x128xf32> -> vector<128x128xf32>
    %c0_52 = arith.constant 0 : index
    %c0_53 = arith.constant 0 : index
    %84 = vector.load %arg8[%c0_52, %c0_53] : memref<128x128xf32, #tpu.memory_space<vmem>>, vector<128x128xf32>
    tpu.vector_store %arg8[%c0_52, %c0_53], %80 {strides = array<i32>} : memref<128x128xf32, #tpu.memory_space<vmem>>, vector<128x128xf32>,
    %c1_54 = arith.constant 1 : index
    %c0_55 = arith.constant 0 : index
    %85 = vector.load %arg8[%c1_54, %c0_55] : memref<128x128xf32, #tpu.memory_space<vmem>>, vector<127x128xf32>
    %86 = vector.extract_strided_slice %77 {offsets = [0, 0], sizes = [127, 128], strides = [1, 1]} : vector<128x128xf32> to vector<127x128xf32>
    %cst_56 = arith.constant 0.000000e+00 : f32
    %87 = vector.shape_cast %21 : vector<127x1xi1> to vector<127x1xi1>
    %88 = vector.broadcast %87 : vector<127x1xi1> to vector<127x128xi1>
    %89 = vector.broadcast %cst_56 : f32 to vector<127x128xf32>
    %90 = arith.select %88, %86, %89 : vector<127x128xi1>, vector<127x128xf32>
    %91 = arith.addf %85, %90 : vector<127x128xf32>
    %c1_57 = arith.constant 1 : index
    %c0_58 = arith.constant 0 : index
    %92 = vector.load %arg8[%c1_57, %c0_58] : memref<128x128xf32, #tpu.memory_space<vmem>>, vector<127x128xf32>
    tpu.vector_store %arg8[%c1_57, %c0_58], %91 {strides = array<i32>} : memref<128x128xf32, #tpu.memory_space<vmem>>, vector<127x128xf32>,
    %c0_59 = arith.constant 0 : index
    %c0_60 = arith.constant 0 : index
    %93 = vector.load %arg8[%c0_59, %c0_60] : memref<128x128xf32, #tpu.memory_space<vmem>>, vector<127x128xf32>
    %94 = vector.extract_strided_slice %83 {offsets = [1, 0], sizes = [127, 128], strides = [1, 1]} : vector<128x128xf32> to vector<127x128xf32>
    %cst_61 = arith.constant 0.000000e+00 : f32
    %95 = vector.shape_cast %39 : vector<127x1xi1> to vector<127x1xi1>
    %96 = vector.broadcast %95 : vector<127x1xi1> to vector<127x128xi1>
    %97 = vector.broadcast %cst_61 : f32 to vector<127x128xf32>
    %98 = arith.select %96, %94, %97 : vector<127x128xi1>, vector<127x128xf32>
    %99 = arith.addf %93, %98 : vector<127x128xf32>
    %c0_62 = arith.constant 0 : index
    %c0_63 = arith.constant 0 : index
    %100 = vector.load %arg8[%c0_62, %c0_63] : memref<128x128xf32, #tpu.memory_space<vmem>>, vector<127x128xf32>
    tpu.vector_store %arg8[%c0_62, %c0_63], %99 {strides = array<i32>} : memref<128x128xf32, #tpu.memory_space<vmem>>, vector<127x128xf32>,
    %c0_64 = arith.constant 0 : index
    %c0_65 = arith.constant 0 : index
    %101 = vector.load %arg8[%c0_64, %c0_65] : memref<128x128xf32, #tpu.memory_space<vmem>>, vector<128x128xf32>
    %c0_66 = arith.constant 0 : index
    %c0_67 = arith.constant 0 : index
    %102 = vector.load %arg6[%c0_66, %c0_67] : memref<1x128xf32, #tpu.memory_space<vmem>>, vector<1x128xf32>
    %103 = vector.broadcast %102 : vector<1x128xf32> to vector<128x128xf32>
    %104 = arith.mulf %101, %103 : vector<128x128xf32>
    %c0_68 = arith.constant 0 : index
    %c0_69 = arith.constant 0 : index
    %105 = vector.load %arg7[%c0_68, %c0_69] : memref<1x128xf32, #tpu.memory_space<vmem>>, vector<1x128xf32>
    %106 = vector.broadcast %105 : vector<1x128xf32> to vector<128x128xf32>
    %107 = arith.addf %104, %106 : vector<128x128xf32>
    %108 = arith.addf %107, %0 : vector<128x128xf32>
    %cst_70 = arith.constant 0.000000e+00 : f32
    %109 = vector.broadcast %cst_70 : f32 to vector<128x128xf32>
    %110 = arith.maximumf %108, %109 : vector<128x128xf32>
    %c0_71 = arith.constant 0 : index
    %c0_72 = arith.constant 0 : index
    %111 = vector.load %arg8[%c0_71, %c0_72] : memref<128x128xf32, #tpu.memory_space<vmem>>, vector<128x128xf32>
    tpu.vector_store %arg8[%c0_71, %c0_72], %110 {strides = array<i32>} : memref<128x128xf32, #tpu.memory_space<vmem>>, vector<128x128xf32>,
    return
  }
  func.func @transform_0(%arg0: i32) -> (i32, i32) {
    %c0_i32 = arith.constant 0 : i32
    %c0_i32_0 = arith.constant 0 : i32
    return %arg0, %c0_i32 : i32, i32
  }
  func.func @transform_1(%arg0: i32) -> (i32, i32, i32) {
    %c0_i32 = arith.constant 0 : i32
    %c0_i32_0 = arith.constant 0 : i32
    %c0_i32_1 = arith.constant 0 : i32
    %c0_i32_2 = arith.constant 0 : i32
    return %c0_i32, %c0_i32_0, %c0_i32_1 : i32, i32, i32
  }
  func.func @transform_2(%arg0: i32) -> (i32, i32) {
    %c0_i32 = arith.constant 0 : i32
    %c0_i32_0 = arith.constant 0 : i32
    %c0_i32_1 = arith.constant 0 : i32
    return %c0_i32, %c0_i32_0 : i32, i32
  }
  func.func @transform_3(%arg0: i32) -> (i32, i32) {
    %c0_i32 = arith.constant 0 : i32
    %c0_i32_0 = arith.constant 0 : i32
    %c0_i32_1 = arith.constant 0 : i32
    return %c0_i32, %c0_i32_0 : i32, i32
  }
  func.func @transform_4(%arg0: i32) -> (i32, i32, i32) {
    %c0_i32 = arith.constant 0 : i32
    %c0_i32_0 = arith.constant 0 : i32
    %c0_i32_1 = arith.constant 0 : i32
    %c0_i32_2 = arith.constant 0 : i32
    return %c0_i32, %c0_i32_0, %c0_i32_1 : i32, i32, i32
  }
  func.func @transform_5(%arg0: i32) -> (i32, i32) {
    %c0_i32 = arith.constant 0 : i32
    %c0_i32_0 = arith.constant 0 : i32
    %c0_i32_1 = arith.constant 0 : i32
    return %c0_i32, %c0_i32_0 : i32, i32
  }
  func.func @transform_6(%arg0: i32) -> (i32, i32) {
    %c0_i32 = arith.constant 0 : i32
    %c0_i32_0 = arith.constant 0 : i32
    %c0_i32_1 = arith.constant 0 : i32
    return %c0_i32, %c0_i32_0 : i32, i32
  }
  func.func @transform_7(%arg0: i32) -> (i32, i32) {
    %c0_i32 = arith.constant 0 : i32
    %c0_i32_0 = arith.constant 0 : i32
    return %arg0, %c0_i32 : i32, i32
  }
}

</mosaic_0001>

<bundles_post_ra>
// kernel: tpu_custom_call.1
= control target key start
LH: loop header
LB: loop body
LE: loop exit
PB: predicated region body
PF: predicated region fallthrough
CT: control target
= control target key end

     0   :  { %12 = vsyncpa [#allocation4], 0  ;;  %s4332_s0 = inlined_call_operand.hbm [shape: f32[256,128], index: 0, kind: input, shape index: {}]   ;;  %s4333_s1 = inlined_call_operand.hbm [shape: f32[3,128,128], index: 1, kind: input, shape index: {}]   ;;  %s4334_s2 = inlined_call_operand.vmem [shape: f32[1,128], index: 2, kind: input, shape index: {}]   ;;  %s4335_s3 = inlined_call_operand.vmem [shape: f32[1,128], index: 3, kind: input, shape index: {}]   ;;  %s4336_s4 = inlined_call_operand.hbm [shape: f32[3,128,128], index: 4, kind: input, shape index: {}]   ;;  %s4337_s5 = inlined_call_operand.vmem [shape: f32[1,128], index: 5, kind: input, shape index: {}]   ;;  %s4338_s6 = inlined_call_operand.vmem [shape: f32[1,128], index: 6, kind: input, shape index: {}]   ;;  %s4339_s7 = inlined_call_operand.hbm [shape: f32[256,128], index: 7, kind: output, shape index: {}]  }
   0x1   :  { %14 = vsyncpa [#allocation4 + $0x1], 0 }
   0x2   :  { %15 = vsyncpa [#allocation7], 0 }
   0x3   :  { %16 = vsyncpa [#allocation5], 0 }
   0x4   :  { %18 = vsyncpa [#allocation5 + $0x1], 0  ;;  %s3573_s24 = smov 0   ;;  %s3575_s25 = smov 0  }
   0x5   :  { %s3577_s26 = smov 0   ;;  %s3579_s27 = smov 0  }
   0x6 LB: > { %s3594_s28 = sadd.s32 4294967295, %s3523_s27   ;;  %s2536_s29 = sadd.s32 4294967294, %s3523_s27   ;;  %s3523_s27 = sphi %s3579_s27, %s4414_s27   ;;  %s3519_s26 = sphi %s3577_s26, %s4413_s26   ;;  %s3515_s25 = sphi %s3575_s25, %s4412_s25   ;;  %s3511_s24 = sphi %s3573_s24, %s4411_s24  }
   0x7   : > { %p44_p0 = scmp.ne.s32.totalorder %s3515_s25, %s3511_s24  ;;  %p4340_p1 = scmp.eq.s32.totalorder %s3594_s28, 0 }
   0x8   : > { %p200_p3 = scmp.eq.s32.totalorder %s2536_s29, 1  ;;  %p2537_p5 = scmp.ge.s32.totalorder %s3523_s27, 1 }
   0x9   : > { %p3603_p4 = por %p4340_p1, %p44_p0  ;;  %p207_p7 = scmp.lt.s32.totalorder %s3523_s27, 3 }
   0xa   : > { %p3608_p6 = por %p200_p3, %p44_p0  ;;  %s3525_s10 = smov [#allocation6]  }
   0xb   : > { %s4347_s30 = scalar_select %p3603_p4, 1, 0 }
   0xc   : > { %s4348_s8 = scalar_select %p3608_p6, 1, 0 }
   0xd   : > { %p3613_p8 = pnand %p2537_p5, %p207_p7  ;;  %s219_s11 = sshll.u32 %s3525_s10, 4  ;;  %s3617_s11 = int_to_ptr.vmem [resolvable:$true] %s219_s11 }
   0xe   : > { %s3526_s13 = smov [#allocation8]   ;;  %s3367_s17 = scalar_lea.hbm %s4333_s1, 6144 }
   0xf   : > { %p3292_p9 = pneg %p3613_p8  ;;  %s238_s14 = sshll.u32 %s3526_s13, 4  ;;  %s3628_s14 = int_to_ptr.vmem [resolvable:$true] %s238_s14 }
  0x10   : > { %p3368_p12 = scmp.ne.s32.totalorder %s4333_s1, %s3367_s17  ;;  %p3374_p5 = scmp.lt.u32.totalorder %s3367_s17, %s4333_s1 }
  0x11   : > { %p3624_p11 = pnand %p3292_p9, %p4340_p1 }
  0x13   : > { %p3369_p13 = pneg %p3624_p11 }
  0x15   : > { %p3370_p0 = pnand %p3369_p13, %p3368_p12 }
  0x17   : > { %p3371_p3 = pneg %p3370_p0 }
  0x19   : > { %p3376_p7 = pnand %p3374_p5, %p3371_p3 }
  0x1b   : > { %3379 = shalt.err (!%p3376_p7)
}
  0x1c   : > { %s3380_s22 = scalar_lea.vmem %s3617_s11, 6144  ;;  %p3388_p2 = scmp.lt.s32.totalorder %s3617_s11, %s3617_s11 }
  0x1d   : > { %p3381_p9 = scmp.ne.s32.totalorder %s3617_s11, %s3380_s22  ;;  %p3389_p12 = scmp.lt.s32.totalorder %s3380_s22, %s3380_s22 }
  0x1f   : > { %p3383_p10 = pnand %p3381_p9, %p3369_p13  ;;  %p3390_p0 = por %p3389_p12, %p3388_p2 }
  0x21   : > { %p3384_p1 = pneg %p3383_p10 }
  0x23   : > { %p3391_p6 = pnand %p3390_p0, %p3384_p1 }
  0x25   : > { %3394 = shalt.err (!%p3391_p6)
}
  0x26   : > { %s4341_s23 = smov 128   ;;  %s3528_s29 = smov 8  }
  0x27   : > { %3295 = dma.hbm_to_vmem [thread:$0]  (!%p3624_p11), %s4333_s1, 6144, %s3617_s11, [#allocation7], %s4341_s23, %s4341_s23, %s3528_s29  }
  0x28   : > { %s3395_s17 = scalar_lea.hbm %s4336_s4, 6144 }
  0x29   : > { %p3396_p1 = scmp.ne.s32.totalorder %s4336_s4, %s3395_s17  ;;  %p3402_p10 = scmp.lt.u32.totalorder %s3395_s17, %s4336_s4 }
  0x2b   : > { %p3398_p2 = pnand %p3396_p1, %p3369_p13 }
  0x2d   : > { %p3399_p6 = pneg %p3398_p2 }
  0x2f   : > { %p3404_p3 = pnand %p3402_p10, %p3399_p6 }
  0x31   : > { %3407 = shalt.err (!%p3404_p3)
}
  0x32   : > { %s3408_s11 = scalar_lea.vmem %s3628_s14, 6144  ;;  %p3416_p12 = scmp.lt.s32.totalorder %s3628_s14, %s3628_s14 }
  0x33   : > { %p3409_p5 = scmp.ne.s32.totalorder %s3628_s14, %s3408_s11  ;;  %p3417_p0 = scmp.lt.s32.totalorder %s3408_s11, %s3408_s11 }
  0x35   : > { %p3411_p7 = pnand %p3409_p5, %p3369_p13  ;;  %p3418_p1 = por %p3417_p0, %p3416_p12 }
  0x37   : > { %p3412_p9 = pneg %p3411_p7 }
  0x39   : > { %p3419_p2 = pnand %p3418_p1, %p3412_p9 }
  0x3b   : > { %3422 = shalt.err (!%p3419_p2)
}
  0x3c   : > { %3298 = dma.hbm_to_vmem [thread:$0]  (!%p3624_p11), %s4336_s4, 6144, %s3628_s14, [#allocation7], %s4341_s23, %s4341_s23, %s3528_s29  }
  0x3d   : > { %s3689_s12 = sadd.s32 1, %s3523_s27   ;;  %s31_s13 = sadd.s32 1, %s3519_s26 }
  0x3e   : > { %s28_s15 = ssub.s32 %s3523_s27, %s3689_s12  ;;  %p38_p13 = scmp.ne.s32.totalorder %s3519_s26, %s3515_s25 }
  0x3f   : > { %p29_p6 = scmp.eq.s32.totalorder %s28_s15, 0  ;;  %p39_p10 = scmp.eq.s32.totalorder %s3523_s27, 0 }
  0x40   : > { %p4351_p3 = scmp.eq.s32.totalorder %s3594_s28, 1  ;;  %p3309_p7 = scmp.lt.s32.totalorder %s3523_s27, 2 }
  0x41   : > { %s3705_s17 = scalar_select %p29_p6, %s3519_s26, %s31_s13  }
  0x42   : > { %p3699_p5 = por %p4351_p3, %p38_p13  ;;  %p40_p9 = por %p39_p10, %p38_p13 }
  0x43   : > { %s258_s18 = sand.u32 1, %s3519_s26   ;;  %s2558_s14 = sshll.u32 %s3523_s27, 11 }
  0x44   : > { %s4352_s16 = scalar_select %p3699_p5, 1, 0 }
  0x45   : > { %s2541_s19 = sshll.u32 %s258_s18, 7  ;;  %s3712_s11 = scalar_lea.hbm %s4332_s0, %s2558_s14 }
  0x46   : > { %s262_s22 = scalar_lea.vmem [#allocation3], %s2541_s19  ;;  %p3716_p11 = pnand %p3309_p7, %p40_p9 }
  0x47   : > { %s269_s10 = sshll.u32 %s262_s22, 4  ;;  %s3720_s15 = scalar_lea.sflag [#allocation4], %s258_s18  ;;  %s3714_s10 = int_to_ptr.vmem [resolvable:$true] %s269_s10 }
  0x48   : > { %s3423_s23 = scalar_lea.hbm %s3712_s11, 2048  ;;  %p3425_p0 = pneg %p3716_p11 }
  0x49   : > { %p3424_p12 = scmp.ne.s32.totalorder %s3712_s11, %s3423_s23  ;;  %s3428_s20 = scalar_lea.hbm %s4332_s0, 4096 }
  0x4a   : > { %p3429_p13 = scmp.lt.u32.totalorder %s3712_s11, %s4332_s0  ;;  %p3430_p6 = scmp.lt.u32.totalorder %s3428_s20, %s3423_s23 }
  0x4b   : > { %p3426_p1 = pnand %p3425_p0, %p3424_p12  ;;  %p3432_p3 = scmp.lt.u32.totalorder %s3423_s23, %s3712_s11 }
  0x4c   : > { %p3431_p10 = por %p3430_p6, %p3429_p13 }
  0x4d   : > { %p3427_p2 = pneg %p3426_p1 }
  0x4e   : > { %p3433_p7 = por %p3432_p3, %p3431_p10 }
  0x50   : > { %p3434_p9 = pnand %p3433_p7, %p3427_p2 }
  0x52   : > { %3437 = shalt.err (!%p3434_p9)
}
  0x53   : > { %s3438_s18 = scalar_lea.vmem %s3714_s10, 2048  ;;  %s3529_s19 = smov [#allocation3]  }
  0x54   : > { %p3439_p12 = scmp.ne.s32.totalorder %s3714_s10, %s3438_s18  ;;  %s3443_s14 = sshll.u32 %s3529_s19, 4  ;;  %s3444_s14 = int_to_ptr.vmem [resolvable:$false] %s3443_s14 }
  0x55   : > { %s3445_s21 = scalar_lea.vmem %s3444_s14, 4096  ;;  %p3446_p4 = scmp.lt.s32.totalorder %s3714_s10, %s3444_s14 }
  0x56   : > { %p3441_p1 = pnand %p3439_p12, %p3425_p0  ;;  %p3447_p13 = scmp.lt.s32.totalorder %s3445_s21, %s3438_s18 }
  0x58   : > { %p3442_p5 = pneg %p3441_p1  ;;  %p3448_p6 = por %p3447_p13, %p3446_p4 }
  0x5a   : > { %p3449_p10 = pnand %p3448_p6, %p3442_p5 }
  0x5c   : > { %3452 = shalt.err (!%p3449_p10)
}
  0x5d   : > { %s4354_s23 = smov 128   ;;  %281 = sbr.rel (%p3613_p8) target bundleno = 712 (0x2c8), region = 48 }
  0x5e   : > { %3302 = dma.hbm_to_vmem [thread:$0]  (!%p3716_p11), %s3712_s11, 2048, %s3714_s10, %s3720_s15, %s4354_s23, %s4354_s23, %s3528_s29  }
  0x5f   : > { %s3754_s20 = sand.u32 (!%p3613_p8), 1, %s3515_s25   ;;  %p4355_p4 = scmp.ne.s32.totalorder (!%p3613_p8), %s4347_s30, 0 }
  0x60   : > { %s2545_s22 = sshll.u32 (!%p3613_p8), %s3754_s20, 7  ;;  %s284_s18 = scalar_lea.sflag (!%p3613_p8), [#allocation4], %s3754_s20 }
  0x61   : > { %s3760_s13 = scalar_lea.vmem (!%p3613_p8), [#allocation3], %s2545_s22 }
  0x64   : > { %3498 = dma.done.wait (%p4355_p4), %s284_s18, 2048  }
  0x65   : > { %3500 = vsyncadd (%p4355_p4), %s284_s18, 4294965248  ;;  %p4356_p5 = scmp.eq.s32.totalorder %s3594_s28, 0 }
  0x67   : > { %3502 = dma.done.wait (%p4356_p5), [#allocation7], 12288   ;;  %p4357_p8 = pmov %p4356_p5 }
  0x68   : > { %v793_v0 = vld [vmem:[#allocation6] sm:$0xff]  ;;  %v794_v1 = vld [vmem:[#allocation6 + $0x8] sm:$0xff]  ;;  %v795_v5 = vld [vmem:[#allocation6 + $0x10] sm:$0xff]  ;;  %vm4344_vm6 = vcmask 1046528   ;;  %s4092_s10 = scalar_lea.vmem [#allocation9], %s2545_s22  ;;  %s2559_s23 = sshll.u32 %s3594_s28, 11 }
  0x69   : > { %3504 = vsyncadd (%p4357_p8), [#allocation7], 4294955008  ;;  %v955_v2 = vld [vmem:[#allocation6 + $0x80] sm:$0xff]  ;;  %v3088_v3 = vpack.c.bf16 %v794_v1, %v793_v0  ;;  %v956_v4 = vld [vmem:[#allocation6 + $0x88] sm:$0xff]  ;;  %s2444_s22 = sshll.u32 %s4092_s10, 4  ;;  %s4285_s9 = scalar_lea.hbm %s4339_s7, %s2559_s23  ;;  %s4287_s22 = int_to_ptr.vmem [resolvable:$true] %s2444_s22 }
  0x6a   : > { %v796_v6 = vld [vmem:[#allocation6 + $0x18] sm:$0xff]  ;;  %v3120_v7 = vpack.c.bf16 %v956_v4, %v955_v2  ;;  %v957_v9 = vld [vmem:[#allocation6 + $0x90] sm:$0xff]  ;;  %v797_v11 = vld [vmem:[#allocation6 + $0x20] sm:$0xff]  ;;  %s2431_s29 = scalar_lea.sflag [#allocation5], %s3754_s20  ;;  %s3453_s11 = scalar_lea.vmem %s4287_s22, 2048 }
  0x6b   : > { %v3092_v8 = vpack.c.bf16 %v796_v6, %v795_v5  ;;  %v958_v10 = vld [vmem:[#allocation6 + $0x98] sm:$0xff]  ;;  %3089 = vmatprep.subr.bf16.mxu0 %v3088_v3  ;;  %v798_v13 = vld [vmem:[#allocation6 + $0x28] sm:$0xff]  ;;  %v959_v14 = vld [vmem:[#allocation6 + $0xa0] sm:$0xff]  ;;  %p3454_p11 = scmp.ne.s32.totalorder %s4287_s22, %s3453_s11  ;;  %p4408_p0 = scmp.ne.s32.totalorder %s4352_s16, 0 }
  0x6c   : > { %v3124_v12 = vpack.c.bf16 %v958_v10, %v957_v9  ;;  %v960_v15 = vld [vmem:[#allocation6 + $0xa8] sm:$0xff]  ;;  %3121 = vmatprep.subr.bf16.mxu1 %v3120_v7  ;;  %3091 = vmatpush3.bf16.msra.mxu0 %v3088_v3  ;;  %v3096_v16 = vpack.c.bf16 %v798_v13, %v797_v11  ;;  %v799_v18 = vld [vmem:[#allocation6 + $0x30] sm:$0xff]  ;;  %v800_v19 = vld [vmem:[#allocation6 + $0x38] sm:$0xff]  ;;  %s3530_s28 = smov [#allocation9]  }
  0x6d   : > { %3123 = vmatpush3.bf16.msra.mxu1 %v3120_v7  ;;  %3093 = vmatprep.subr.bf16.mxu0 %v3092_v8  ;;  %v3128_v17 = vpack.c.bf16 %v960_v15, %v959_v14  ;;  %v961_v20 = vld [vmem:[#allocation6 + $0xb0] sm:$0xff]  ;;  %v962_v21 = vld [vmem:[#allocation6 + $0xb8] sm:$0xff]  ;;  %v3100_v22 = vpack.c.bf16 %v800_v19, %v799_v18  ;;  %v801_v24 = vld [vmem:[#allocation6 + $0x40] sm:$0xff]  ;;  %p3455_p2 = pnand %p3454_p11, %p4408_p0 }
  0x6e   : > { %3125 = vmatprep.subr.bf16.mxu1 %v3124_v12  ;;  %v3132_v23 = vpack.c.bf16 %v962_v21, %v961_v20  ;;  %v802_v25 = vld [vmem:[#allocation6 + $0x48] sm:$0xff]  ;;  %v3771_v26 = vld [vmem:[%s3760_s13] sm:$0xff]  ;;  %v803_v31 = vld [vmem:[#allocation6 + $0x50] sm:$0xff] }
  0x6f   : > { %v963_v27 = vld [vmem:[#allocation6 + $0xc0] sm:$0xff]  ;;  %v964_v28 = vld [vmem:[#allocation6 + $0xc8] sm:$0xff]  ;;  %2784 = vmatprep.mubr.f32.mxu0 %v3771_v26  ;;  %2840 = vmatprep.mubr.f32.mxu1 %v3771_v26  ;;  %v3104_v29 = vpack.c.bf16 %v802_v25, %v801_v24  ;;  %v804_v32 = vld [vmem:[#allocation6 + $0x58] sm:$0xff]  ;;  %p3456_p3 = pneg %p3455_p2 }
  0x70   : > { %3095 = vmatpush3.bf16.msra.mxu0 %v3092_v8  ;;  %v3136_v30 = vpack.c.bf16 %v964_v28, %v963_v27  ;;  %v965_v33 = vld [vmem:[#allocation6 + $0xd0] sm:$0xff]  ;;  %v966_v34 = vld [vmem:[#allocation6 + $0xd8] sm:$0xff]  ;;  %v3108_v35 = vpack.c.bf16 %v804_v32, %v803_v31  ;;  %v805_v37 = vld [vmem:[#allocation6 + $0x60] sm:$0xff] }
  0x71   : > { %3127 = vmatpush3.bf16.msra.mxu1 %v3124_v12  ;;  %3097 = vmatprep.subr.bf16.mxu0 %v3096_v16  ;;  %v3140_v36 = vpack.c.bf16 %v966_v34, %v965_v33  ;;  %v806_v38 = vld [vmem:[#allocation6 + $0x68] sm:$0xff]  ;;  %v967_v39 = vld [vmem:[#allocation6 + $0xe0] sm:$0xff]  ;;  %v807_v43 = vld [vmem:[#allocation6 + $0x70] sm:$0xff] }
  0x72   : > { %3129 = vmatprep.subr.bf16.mxu1 %v3128_v17  ;;  %v968_v40 = vld [vmem:[#allocation6 + $0xe8] sm:$0xff]  ;;  %v3112_v41 = vpack.c.bf16 %v806_v38, %v805_v37  ;;  %v808_v44 = vld [vmem:[#allocation6 + $0x78] sm:$0xff]  ;;  %v969_v45 = vld [vmem:[#allocation6 + $0xf0] sm:$0xff] }
  0x73   : > { %v3144_v42 = vpack.c.bf16 %v968_v40, %v967_v39  ;;  %v970_v46 = vld [vmem:[#allocation6 + $0xf8] sm:$0xff]  ;;  %v3116_v47 = vpack.c.bf16 %v808_v44, %v807_v43  ;;  %v1117_v49 = vld [vmem:[#allocation6 + $0x100] sm:$0xff]  ;;  %v1118_v50 = vld [vmem:[#allocation6 + $0x108] sm:$0xff] }
  0x74   : > { %3099 = vmatpush3.bf16.msra.mxu0 %v3096_v16  ;;  %v3148_v48 = vpack.c.bf16 %v970_v46, %v969_v45  ;;  %v3152_v51 = vpack.c.bf16 %v1118_v50, %v1117_v49  ;;  %v1119_v52 = vld [vmem:[#allocation6 + $0x110] sm:$0xff]  ;;  %v1120_v53 = vld [vmem:[#allocation6 + $0x118] sm:$0xff]  ;;  %v3776_v54 = vld [vmem:[%s3760_s13 + $0x8] sm:$0xff] }
  0x75   : > { %3131 = vmatpush3.bf16.msra.mxu1 %v3128_v17  ;;  %3101 = vmatprep.subr.bf16.mxu0 %v3100_v22  ;;  %v3779_v55 = vld [vmem:[%s3760_s13 + $0x10] sm:$0xff]  ;;  %v3156_v56 = vpack.c.bf16 %v1120_v53, %v1119_v52  ;;  %v1121_v57 = vld [vmem:[#allocation6 + $0x120] sm:$0xff]  ;;  %v1122_v58 = vld [vmem:[#allocation6 + $0x128] sm:$0xff] }
  0x76   : > { %3133 = vmatprep.subr.bf16.mxu1 %v3132_v23  ;;  %v3784_v59 = vld [vmem:[%s3760_s13 + $0x18] sm:$0xff]  ;;  %v3789_v60 = vld [vmem:[%s3760_s13 + $0x20] sm:$0xff]  ;;  %v3160_v61 = vpack.c.bf16 %v1122_v58, %v1121_v57  ;;  %v1123_v62 = vld [vmem:[#allocation6 + $0x130] sm:$0xff] }
  0x77   : > { %v1124_v63 = vld [vmem:[#allocation6 + $0x138] sm:$0xff]  ;;  %v3794_v0 = vld [vmem:[%s3760_s13 + $0x28] sm:$0xff]  ;;  %v334_v1 = vld [vmem:[%s3760_s13 + $0x30] sm:$0xff] }
  0x78   : > { %3103 = vmatpush3.bf16.msra.mxu0 %v3100_v22  ;;  %v3164_v2 = vpack.c.bf16 %v1124_v63, %v1123_v62  ;;  %v1125_v3 = vld [vmem:[#allocation6 + $0x140] sm:$0xff]  ;;  %v1126_v4 = vld [vmem:[#allocation6 + $0x148] sm:$0xff]  ;;  %v335_v5 = vld [vmem:[%s3760_s13 + $0x38] sm:$0xff] }
  0x79   : > { %3135 = vmatpush3.bf16.msra.mxu1 %v3132_v23  ;;  %3105 = vmatprep.subr.bf16.mxu0 %v3104_v29  ;;  %v336_v6 = vld [vmem:[%s3760_s13 + $0x40] sm:$0xff]  ;;  %v3168_v7 = vpack.c.bf16 %v1126_v4, %v1125_v3  ;;  %v1127_v8 = vld [vmem:[#allocation6 + $0x150] sm:$0xff]  ;;  %v1128_v9 = vld [vmem:[#allocation6 + $0x158] sm:$0xff] }
  0x7a   : > { %3137 = vmatprep.subr.bf16.mxu1 %v3136_v30  ;;  %v337_v10 = vld [vmem:[%s3760_s13 + $0x48] sm:$0xff]  ;;  %v338_v11 = vld [vmem:[%s3760_s13 + $0x50] sm:$0xff]  ;;  %v3172_v12 = vpack.c.bf16 %v1128_v9, %v1127_v8  ;;  %v1129_v13 = vld [vmem:[#allocation6 + $0x160] sm:$0xff] }
  0x7b   : > { %v1130_v14 = vld [vmem:[#allocation6 + $0x168] sm:$0xff]  ;;  %v339_v15 = vld [vmem:[%s3760_s13 + $0x58] sm:$0xff]  ;;  %v340_v16 = vld [vmem:[%s3760_s13 + $0x60] sm:$0xff] }
  0x7c   : > { %3107 = vmatpush3.bf16.msra.mxu0 %v3104_v29  ;;  %v3176_v17 = vpack.c.bf16 %v1130_v14, %v1129_v13  ;;  %v1131_v18 = vld [vmem:[#allocation6 + $0x170] sm:$0xff]  ;;  %v1132_v19 = vld [vmem:[#allocation6 + $0x178] sm:$0xff]  ;;  %v341_v20 = vld [vmem:[%s3760_s13 + $0x68] sm:$0xff] }
  0x7d   : > { %3139 = vmatpush3.bf16.msra.mxu1 %v3136_v30  ;;  %3109 = vmatprep.subr.bf16.mxu0 %v3108_v35  ;;  %v342_v21 = vld [vmem:[%s3760_s13 + $0x70] sm:$0xff]  ;;  %v3180_v22 = vpack.c.bf16 %v1132_v19, %v1131_v18  ;;  %v343_v23 = vld [vmem:[%s3760_s13 + $0x78] sm:$0xff]  ;;  %v1628_v24 = vld [vmem:[#allocation8] sm:$0xff] }
  0x7e   : > { %3141 = vmatprep.subr.bf16.mxu1 %v3140_v36  ;;  %v1629_v25 = vld [vmem:[#allocation8 + $0x8] sm:$0xff]  ;;  %v1630_v30 = vld [vmem:[#allocation8 + $0x10] sm:$0xff]  ;;  %v1631_v31 = vld [vmem:[#allocation8 + $0x18] sm:$0xff] }
  0x7f   : > { %v3184_v27 = vpack.c.bf16 %v1629_v25, %v1628_v24  ;;  %v1791_v28 = vld [vmem:[#allocation8 + $0x88] sm:$0xff]  ;;  %v1792_v32 = vld [vmem:[#allocation8 + $0x90] sm:$0xff]  ;;  %v3188_v33 = vpack.c.bf16 %v1631_v31, %v1630_v30  ;;  %v1793_v34 = vld [vmem:[#allocation8 + $0x98] sm:$0xff] }
  0x80   : > { %3111 = vmatpush3.bf16.msra.mxu0 %v3108_v35  ;;  %v3220_v35 = vpack.c.bf16 %v1793_v34, %v1792_v32  ;;  %v1633_v37 = vld [vmem:[#allocation8 + $0x28] sm:$0xff]  ;;  %v1794_v38 = vld [vmem:[#allocation8 + $0xa0] sm:$0xff]  ;;  %v1635_v43 = vld [vmem:[#allocation8 + $0x38] sm:$0xff] }
  0x81   : > { %3143 = vmatpush3.bf16.msra.mxu1 %v3140_v36  ;;  %3113 = vmatprep.subr.bf16.mxu0 %v3112_v41  ;;  %v1632_v36 = vld [vmem:[#allocation8 + $0x20] sm:$0xff]  ;;  %v1795_v40 = vld [vmem:[#allocation8 + $0xa8] sm:$0xff]  ;;  %v1796_v44 = vld [vmem:[#allocation8 + $0xb0] sm:$0xff] }
  0x82   : > { %3145 = vmatprep.subr.bf16.mxu1 %v3144_v42  ;;  %v3192_v39 = vpack.c.bf16 %v1633_v37, %v1632_v36  ;;  %v1797_v46 = vld [vmem:[#allocation8 + $0xb8] sm:$0xff]  ;;  %v1637_v49 = vld [vmem:[#allocation8 + $0x48] sm:$0xff]  ;;  %v1798_v50 = vld [vmem:[#allocation8 + $0xc0] sm:$0xff] }
  0x83   : > { %v1799_v52 = vld [vmem:[#allocation8 + $0xc8] sm:$0xff]  ;;  %v1801_v58 = vld [vmem:[#allocation8 + $0xd8] sm:$0xff]  ;;  %v1802_v62 = vld [vmem:[#allocation8 + $0xe0] sm:$0xff] }
  0x84   : > { %3115 = vmatpush3.bf16.msra.mxu0 %v3112_v41  ;;  %v3224_v41 = vpack.c.bf16 %v1795_v40, %v1794_v38  ;;  %v3232_v53 = vpack.c.bf16 %v1799_v52, %v1798_v50  ;;  %v1643_v3 = vld [vmem:[#allocation8 + $0x78] sm:$0xff]  ;;  %v1804_v4 = vld [vmem:[#allocation8 + $0xf0] sm:$0xff]  ;;  %v1952_v8 = vld [vmem:[#allocation8 + $0x100] sm:$0xff] }
  0x85   : > { %3147 = vmatpush3.bf16.msra.mxu1 %v3144_v42  ;;  %3117 = vmatprep.subr.bf16.mxu0 %v3116_v47  ;;  %v1634_v42 = vld [vmem:[#allocation8 + $0x30] sm:$0xff]  ;;  %v1953_v9 = vld [vmem:[#allocation8 + $0x108] sm:$0xff] }
  0x86   : > { %3149 = vmatprep.subr.bf16.mxu1 %v3148_v48  ;;  %v3196_v45 = vpack.c.bf16 %v1635_v43, %v1634_v42 }
  0x88   : > { %3119 = vmatpush3.bf16.msra.mxu0 %v3116_v47  ;;  %v3228_v47 = vpack.c.bf16 %v1797_v46, %v1796_v44 }
  0x89   : > { %3151 = vmatpush3.bf16.msra.mxu1 %v3148_v48  ;;  %3153 = vmatprep.subr.bf16.mxu0 %v3152_v51  ;;  %v1636_v48 = vld [vmem:[#allocation8 + $0x40] sm:$0xff] }
  0x8a   : > { %3185 = vmatprep.subr.bf16.mxu1 %v3184_v27 }
  0x8b   : > { %2785 = vmatmul.mubr.f32.vlgmr.msra.gmra.mrb[0].mxu0 %v3776_v54 }
  0x8c   : > { %2841 = vmatmul.mubr.f32.vlgmr.msra.gmra.mrb[0].mxu1 %v3776_v54  ;;  %3155 = vmatpush3.bf16.msra.mxu0 %v3152_v51  ;;  %v3200_v51 = vpack.c.bf16 %v1637_v49, %v1636_v48 }
  0x8d   : > { %2787 = vmatprep.mubr.f32.mxu0 %v3779_v55  ;;  %2843 = vmatprep.mubr.f32.mxu1 %v3779_v55 }
  0x8e   : > { %3157 = vmatprep.subr.bf16.mxu0 %v3156_v56  ;;  %3187 = vmatpush3.bf16.msra.mxu1 %v3184_v27 }
  0x8f   : > { %2788 = vmatmul.mubr.f32.gmra.mrb[2].mxu0 %v3784_v59  ;;  %3189 = vmatprep.subr.bf16.mxu1 %v3188_v33 }
  0x90   : > { %2844 = vmatmul.mubr.f32.gmra.mrb[2].mxu1 %v3784_v59  ;;  %3159 = vmatpush3.bf16.msra.mxu0 %v3156_v56  ;;  %v1800_v56 = vld [vmem:[#allocation8 + $0xd0] sm:$0xff] }
  0x91   : > { %2790 = vmatprep.mubr.f32.mxu0 %v3789_v60  ;;  %2846 = vmatprep.mubr.f32.mxu1 %v3789_v60 }
  0x92   : > { %3161 = vmatprep.subr.bf16.mxu0 %v3160_v61  ;;  %3191 = vmatpush3.bf16.msra.mxu1 %v3188_v33 }
  0x93   : > { %2791 = vmatmul.mubr.f32.gmra.mrb[4].mxu0 %v3794_v0  ;;  %3193 = vmatprep.subr.bf16.mxu1 %v3192_v39 }
  0x94   : > { %2847 = vmatmul.mubr.f32.gmra.mrb[4].mxu1 %v3794_v0  ;;  %3163 = vmatpush3.bf16.msra.mxu0 %v3160_v61  ;;  %v1641_v61 = vld [vmem:[#allocation8 + $0x68] sm:$0xff] }
  0x95   : > { %2793 = vmatprep.mubr.f32.mxu0 %v334_v1  ;;  %2849 = vmatprep.mubr.f32.mxu1 %v334_v1 }
  0x96   : > { %3165 = vmatprep.subr.bf16.mxu0 %v3164_v2  ;;  %3195 = vmatpush3.bf16.msra.mxu1 %v3192_v39 }
  0x97   : > { %2794 = vmatmul.mubr.f32.gmra.mrb[6].mxu0 %v335_v5  ;;  %3197 = vmatprep.subr.bf16.mxu1 %v3196_v45 }
  0x98   : > { %2850 = vmatmul.mubr.f32.gmra.mrb[6].mxu1 %v335_v5  ;;  %3167 = vmatpush3.bf16.msra.mxu0 %v3164_v2  ;;  %v1642_v2 = vld [vmem:[#allocation8 + $0x70] sm:$0xff] }
  0x99   : > { %2796 = vmatprep.mubr.f32.mxu0 %v336_v6  ;;  %2852 = vmatprep.mubr.f32.mxu1 %v336_v6 }
  0x9a   : > { %3169 = vmatprep.subr.bf16.mxu0 %v3168_v7  ;;  %3199 = vmatpush3.bf16.msra.mxu1 %v3196_v45 }
  0x9b   : > { %2797 = vmatmul.mubr.f32.gmra.mrb[8].mxu0 %v337_v10  ;;  %3201 = vmatprep.subr.bf16.mxu1 %v3200_v51 }
  0x9c   : > { %2853 = vmatmul.mubr.f32.gmra.mrb[8].mxu1 %v337_v10  ;;  %3171 = vmatpush3.bf16.msra.mxu0 %v3168_v7 }
  0x9d   : > { %2799 = vmatprep.mubr.f32.mxu0 %v338_v11  ;;  %2855 = vmatprep.mubr.f32.mxu1 %v338_v11 }
  0x9e   : > { %3173 = vmatprep.subr.bf16.mxu0 %v3172_v12  ;;  %3203 = vmatpush3.bf16.msra.mxu1 %v3200_v51 }
  0x9f   : > { %2800 = vmatmul.mubr.f32.gmra.mrb[10].mxu0 %v339_v15 }
  0xa0   : > { %2856 = vmatmul.mubr.f32.gmra.mrb[10].mxu1 %v339_v15  ;;  %3175 = vmatpush3.bf16.msra.mxu0 %v3172_v12 }
  0xa1   : > { %2802 = vmatprep.mubr.f32.mxu0 %v340_v16  ;;  %2858 = vmatprep.mubr.f32.mxu1 %v340_v16 }
  0xa2   : > { %3177 = vmatprep.subr.bf16.mxu0 %v3176_v17 }
  0xa3   : > { %2803 = vmatmul.mubr.f32.gmra.mrb[12].mxu0 %v341_v20 }
  0xa4   : > { %2859 = vmatmul.mubr.f32.gmra.mrb[12].mxu1 %v341_v20  ;;  %3179 = vmatpush3.bf16.msra.mxu0 %v3176_v17 }
  0xa5   : > { %2805 = vmatprep.mubr.f32.mxu0 %v342_v21  ;;  %2861 = vmatprep.mubr.f32.mxu1 %v342_v21 }
  0xa6   : > { %3181 = vmatprep.subr.bf16.mxu0 %v3180_v22 }
  0xa7   : > { %2806 = vmatmul.mubr.f32.gmra.mrb[14].mxu0 %v343_v23 }
  0xa8   : > { %2862 = vmatmul.mubr.f32.gmra.mrb[14].mxu1 %v343_v23  ;;  %3183 = vmatpush3.bf16.msra.mxu0 %v3180_v22 }
  0xa9   : > { %2896 = vmatprep.mubr.f32.mxu0 %v3771_v26  ;;  %v1790_v26 = vld [vmem:[#allocation8 + $0x80] sm:$0xff] }
  0xaa   : > { %v3216_v29 = vpack.c.bf16 %v1791_v28, %v1790_v26 }
  0xab   : > { %2897 = vmatmul.mubr.f32.vlgmr.msra.gmra.mrb[16].mxu0 %v3776_v54  ;;  %v1638_v54 = vld [vmem:[#allocation8 + $0x50] sm:$0xff] }
  0xac   : > { %2899 = vmatprep.mubr.f32.mxu0 %v3779_v55  ;;  %3217 = vmatprep.subr.bf16.mxu0 %v3216_v29  ;;  %v1639_v55 = vld [vmem:[#allocation8 + $0x58] sm:$0xff] }
  0xad   : > { %3219 = vmatpush3.bf16.msra.mxu0 %v3216_v29  ;;  %v3204_v57 = vpack.c.bf16 %v1639_v55, %v1638_v54 }
  0xae   : > { %3221 = vmatprep.subr.bf16.mxu0 %v3220_v35 }
  0xaf   : > { %2900 = vmatmul.mubr.f32.gmra.mrb[18].mxu0 %v3784_v59  ;;  %v3236_v59 = vpack.c.bf16 %v1801_v58, %v1800_v56  ;;  %3205 = vmatprep.subr.bf16.mxu1 %v3204_v57 }
  0xb0   : > { %2902 = vmatprep.mubr.f32.mxu0 %v3789_v60  ;;  %3207 = vmatpush3.bf16.msra.mxu1 %v3204_v57  ;;  %v1640_v60 = vld [vmem:[#allocation8 + $0x60] sm:$0xff] }
  0xb1   : > { %3223 = vmatpush3.bf16.msra.mxu0 %v3220_v35  ;;  %v3208_v63 = vpack.c.bf16 %v1641_v61, %v1640_v60 }
  0xb2   : > { %3225 = vmatprep.subr.bf16.mxu0 %v3224_v41 }
  0xb3   : > { %2903 = vmatmul.mubr.f32.gmra.mrb[20].mxu0 %v3794_v0  ;;  %v1803_v0 = vld [vmem:[#allocation8 + $0xe8] sm:$0xff]  ;;  %3209 = vmatprep.subr.bf16.mxu1 %v3208_v63 }
  0xb4   : > { %2905 = vmatprep.mubr.f32.mxu0 %v334_v1  ;;  %v3240_v1 = vpack.c.bf16 %v1803_v0, %v1802_v62  ;;  %3211 = vmatpush3.bf16.msra.mxu1 %v3208_v63 }
  0xb5   : > { %3227 = vmatpush3.bf16.msra.mxu0 %v3224_v41 }
  0xb6   : > { %3229 = vmatprep.subr.bf16.mxu0 %v3228_v47 }
  0xb7   : > { %2906 = vmatmul.mubr.f32.gmra.mrb[22].mxu0 %v335_v5  ;;  %v3212_v5 = vpack.c.bf16 %v1643_v3, %v1642_v2 }
  0xb8   : > { %2908 = vmatprep.mubr.f32.mxu0 %v336_v6  ;;  %v1805_v6 = vld [vmem:[#allocation8 + $0xf8] sm:$0xff] }
  0xb9   : > { %3231 = vmatpush3.bf16.msra.mxu0 %v3228_v47  ;;  %v3244_v7 = vpack.c.bf16 %v1805_v6, %v1804_v4  ;;  %3213 = vmatprep.subr.bf16.mxu1 %v3212_v5 }
  0xba   : > { %3233 = vmatprep.subr.bf16.mxu0 %v3232_v53  ;;  %3215 = vmatpush3.bf16.msra.mxu1 %v3212_v5 }
  0xbb   : > { %2909 = vmatmul.mubr.f32.gmra.mrb[24].mxu0 %v337_v10  ;;  %v3816_v10 = vpack.c.bf16 %v1953_v9, %v1952_v8 }
  0xbc   : > { %2911 = vmatprep.mubr.f32.mxu0 %v338_v11  ;;  %v344_v11 = vlaneseq }
  0xbd   : > { %3235 = vmatpush3.bf16.msra.mxu0 %v3232_v53  ;;  %3249 = vmatprep.subr.bf16.mxu1 %v3816_v10 }
  0xbe   : > { %3237 = vmatprep.subr.bf16.mxu0 %v3236_v59  ;;  %v3819_v12 = vshrl.u32 %v344_v11, 7 }
  0xbf   : > { %2912 = vmatmul.mubr.f32.gmra.mrb[26].mxu0 %v339_v15 }
  0xc0   : > { %2914 = vmatprep.mubr.f32.mxu0 %v340_v16  ;;  %v3822_v13 = vadd.s32 8, %v3819_v12  ;;  %v3826_v19 = vadd.s32 24, %v3819_v12  ;;  %v3830_v26 = vadd.s32 40, %v3819_v12  ;;  %v3833_v30 = vadd.s32 56, %v3819_v12 }
  0xc1   : > { %3239 = vmatpush3.bf16.msra.mxu0 %v3236_v59  ;;  %v3846_v45 = vadd.s32 72, %v3819_v12  ;;  %v3862_v62 = vadd.s32 88, %v3819_v12  ;;  %v3873_v8 = vadd.s32 120, %v3819_v12 }
  0xc2   : > { %3241 = vmatprep.subr.bf16.mxu0 %v3240_v1  ;;  %v362_v18 = vadd.s32 1, %v3822_v13  ;;  %v364_v25 = vadd.s32 1, %v3826_v19  ;;  %v366_v36 = vadd.s32 1, %v3830_v26  ;;  %v368_v38 = vadd.s32 1, %v3833_v30 }
  0xc3   : > { %2915 = vmatmul.mubr.f32.gmra.mrb[28].mxu0 %v341_v20  ;;  %v370_v57 = vadd.s32 1, %v3846_v45 }
  0xc4   : > { %2917 = vmatprep.mubr.f32.mxu0 %v342_v21  ;;  %v388_v24 = vand.u32 15, %v362_v18  ;;  %v402_v35 = vand.u32 15, %v364_v25  ;;  %v416_v49 = vand.u32 15, %v366_v36  ;;  %v430_v51 = vand.u32 15, %v368_v38 }
  0xc5   : > { %3243 = vmatpush3.bf16.msra.mxu0 %v3240_v1  ;;  %v444_v6 = vand.u32 15, %v370_v57  ;;  %v610_v57 = vand.u32 15, %v3826_v19 }
  0xc6   : > { %3245 = vmatprep.subr.bf16.mxu0 %v3244_v7  ;;  %vm3835_vm0 = vcmp.ne.s32.totalorder %v388_v24, 0  ;;  %vm3848_vm1 = vcmp.ne.s32.totalorder %v402_v35, 0  ;;  %vm3857_vm2 = vcmp.ne.s32.totalorder %v416_v49, 0  ;;  %vm3866_vm3 = vcmp.ne.s32.totalorder %v430_v51, 0 }
  0xc7   : > { %2918 = vmatmul.mubr.f32.gmra.mrb[30].mxu0 %v343_v23  ;;  %vm3884_vm4 = vcmp.ne.s32.totalorder %v444_v6, 0  ;;  %vm3937_vm10 = vcmp.ne.s32.totalorder %v610_v57, 15 }
  0xc9   : > { %3247 = vmatpush3.bf16.msra.mxu0 %v3244_v7 }
 0x15e   : > { %v2786_v14 = vpop.f32.mrb[0].mxu0 }
 0x15f   : > { %v2842_v15 = vpop.f32.mrb[0].mxu1  ;;  %v875_v16 = vpop.f32.mrb[1].mxu0  ;;  %v1343_v41 = vsel %vm3835_vm0, %v2786_v14, 0.0  ;;  %v372_v14 = vadd.s32 1, %v3862_v62 }
 0x160   : > { %1279 = vst [vmem:[#allocation2 + $0x8] sm:$0xff] %v2842_v15  ;;  %v1037_v17 = vpop.f32.mrb[1].mxu1  ;;  %v3877_v15 = vadd.s32 104, %v3819_v12  ;;  %v376_v12 = vadd.s32 1, %v3873_v8 }
 0x161   : > { %1278 = vst [vmem:[#allocation2] sm:$0xff] %v1037_v17 }
 0x162   : > { %v2789_v20 = vpop.f32.mrb[2].mxu0  ;;  %v486_v38 = vand.u32 15, %v376_v12 }
 0x163   : > { %v2845_v21 = vpop.f32.mrb[2].mxu1  ;;  %v885_v22 = vpop.f32.mrb[3].mxu0  ;;  %v1345_v54 = vsel %vm3848_vm1, %v2789_v20, 0.0 }
 0x164   : > { %1281 = vst [vmem:[#allocation2 + $0x18] sm:$0xff] %v2845_v21  ;;  %v1047_v23 = vpop.f32.mrb[3].mxu1  ;;  %vm3901_vm7 = vcmp.ne.s32.totalorder %v486_v38, 0  ;;  %v638_v38 = vand.u32 15, %v3833_v30 }
 0x165   : > { %1280 = vst [vmem:[#allocation2 + $0x10] sm:$0xff] %v1047_v23 }
 0x166   : > { %v2792_v27 = vpop.f32.mrb[4].mxu0  ;;  %vm3973_vm12 = vcmp.ne.s32.totalorder %v638_v38, 15 }
 0x167   : > { %v2848_v28 = vpop.f32.mrb[4].mxu1  ;;  %v895_v29 = vpop.f32.mrb[5].mxu0  ;;  %v1347_v3 = vsel %vm3857_vm2, %v2792_v27, 0.0 }
 0x168   : > { %v1294_v31 = vld [vmem:[#allocation2 + $0x1] sm:$0xff]  ;;  %1283 = vst [vmem:[#allocation2 + $0x28] sm:$0xff] %v2848_v28  ;;  %v1057_v32 = vpop.f32.mrb[5].mxu1  ;;  %v458_v28 = vand.u32 15, %v372_v14 }
 0x169   : > { %v1358_v34 = vadd.f32 %v1294_v31, %v875_v16  ;;  %1282 = vst [vmem:[#allocation2 + $0x20] sm:$0xff] %v1057_v32 }
 0x16a   : > { %v3840_v37 = vpop.f32.mrb[6].mxu0  ;;  %vm3893_vm5 = vcmp.ne.s32.totalorder %v458_v28, 0 }
 0x16b   : > { %1374 = vst [vmem:[#allocation2 + $0x1] sm:$0xff] %v1358_v34  ;;  %v2851_v39 = vpop.f32.mrb[6].mxu1  ;;  %v905_v40 = vpop.f32.mrb[7].mxu0  ;;  %v1349_v20 = vsel %vm3866_vm3, %v3840_v37, 0.0 }
 0x16c   : > { %v1295_v42 = vld [vmem:[#allocation2 + $0x9] sm:$0xff]  ;;  %v1296_v43 = vld [vmem:[#allocation2 + $0x11] sm:$0xff]  ;;  %1285 = vst [vmem:[#allocation2 + $0x38] sm:$0xff] %v2851_v39  ;;  %v1067_v44 = vpop.f32.mrb[7].mxu1 }
 0x16d   : > { %v1359_v47 = vadd.f32 %v1343_v41, %v1295_v42  ;;  %v1360_v48 = vadd.f32 %v1296_v43, %v885_v22  ;;  %1284 = vst [vmem:[#allocation2 + $0x30] sm:$0xff] %v1067_v44 }
 0x16e   : > { %v3852_v50 = vpop.f32.mrb[8].mxu0 }
 0x16f   : > { %1375 = vst [vmem:[#allocation2 + $0x9] sm:$0xff] %v1359_v47  ;;  %1376 = vst [vmem:[#allocation2 + $0x11] sm:$0xff] %v1360_v48  ;;  %v2854_v52 = vpop.f32.mrb[8].mxu1  ;;  %v915_v53 = vpop.f32.mrb[9].mxu0  ;;  %v1351_v35 = vsel %vm3884_vm4, %v3852_v50, 0.0  ;;  %v596_v47 = vand.u32 15, %v3822_v13 }
 0x170   : > { %v1297_v55 = vld [vmem:[#allocation2 + $0x19] sm:$0xff]  ;;  %v1298_v56 = vld [vmem:[#allocation2 + $0x21] sm:$0xff]  ;;  %1287 = vst [vmem:[#allocation2 + $0x48] sm:$0xff] %v2854_v52  ;;  %v1077_v58 = vpop.f32.mrb[9].mxu1 }
 0x171   : > { %v1361_v60 = vadd.f32 %v1345_v54, %v1297_v55  ;;  %v1362_v61 = vadd.f32 %v1298_v56, %v895_v29  ;;  %1286 = vst [vmem:[#allocation2 + $0x40] sm:$0xff] %v1077_v58  ;;  %v374_v29 = vadd.s32 1, %v3877_v15  ;;  %vm3918_vm9 = vcmp.ne.s32.totalorder %v596_v47, 15 }
 0x172   : > { %v3864_v63 = vpop.f32.mrb[10].mxu0  ;;  %v1390_v58 = vld [vmem:[#allocation2] sm:$0xff] }
 0x173   : > { %1377 = vst [vmem:[#allocation2 + $0x19] sm:$0xff] %v1361_v60  ;;  %1378 = vst [vmem:[#allocation2 + $0x21] sm:$0xff] %v1362_v61  ;;  %v2857_v1 = vpop.f32.mrb[10].mxu1  ;;  %v925_v2 = vpop.f32.mrb[11].mxu0  ;;  %v472_v43 = vand.u32 15, %v374_v29  ;;  %v1353_v50 = vsel %vm3893_vm5, %v3864_v63, 0.0 }
 0x174   : > { %v1299_v4 = vld [vmem:[#allocation2 + $0x29] sm:$0xff]  ;;  %v1300_v5 = vld [vmem:[#allocation2 + $0x31] sm:$0xff]  ;;  %1289 = vst [vmem:[#allocation2 + $0x58] sm:$0xff] %v2857_v1  ;;  %v1087_v7 = vpop.f32.mrb[11].mxu1  ;;  %v3914_v63 = vld [vmem:[%s4334_s2] ss:$0 sm:$0xff] }
 0x175   : > { %v1363_v9 = vadd.f32 %v1347_v3, %v1299_v4  ;;  %v1364_v11 = vadd.f32 %v1300_v5, %v905_v40  ;;  %1288 = vst [vmem:[#allocation2 + $0x50] sm:$0xff] %v1087_v7  ;;  %vm3905_vm8 = vcmp.ne.s32.totalorder %v472_v43, 0 }
 0x176   : > { %v3879_v16 = vpop.f32.mrb[12].mxu0 }
 0x177   : > { %1379 = vst [vmem:[#allocation2 + $0x29] sm:$0xff] %v1363_v9  ;;  %1380 = vst [vmem:[#allocation2 + $0x31] sm:$0xff] %v1364_v11  ;;  %v2860_v17 = vpop.f32.mrb[12].mxu1  ;;  %v935_v18 = vpop.f32.mrb[13].mxu0  ;;  %v1355_v6 = vsel %vm3905_vm8, %v3879_v16, 0.0 }
 0x178   : > { %v1301_v22 = vld [vmem:[#allocation2 + $0x39] sm:$0xff]  ;;  %v1302_v23 = vld [vmem:[#allocation2 + $0x41] sm:$0xff]  ;;  %1291 = vst [vmem:[#allocation2 + $0x68] sm:$0xff] %v2860_v17  ;;  %v1097_v24 = vpop.f32.mrb[13].mxu1 }
 0x179   : > { %v1365_v25 = vadd.f32 %v1349_v20, %v1301_v22  ;;  %v1366_v27 = vadd.f32 %v1302_v23, %v915_v53  ;;  %1290 = vst [vmem:[#allocation2 + $0x60] sm:$0xff] %v1097_v24  ;;  %v3928_v17 = vld [vmem:[%s4335_s3] ss:$0 sm:$0xff]  ;;  %v1392_v23 = vld [vmem:[#allocation2 + $0x10] sm:$0xff] }
 0x17a   : > { %v2807_v31 = vpop.f32.mrb[14].mxu0  ;;  %v1394_v43 = vld [vmem:[#allocation2 + $0x20] sm:$0xff] }
 0x17b   : > { %1381 = vst [vmem:[#allocation2 + $0x39] sm:$0xff] %v1365_v25  ;;  %1382 = vst [vmem:[#allocation2 + $0x41] sm:$0xff] %v1366_v27  ;;  %v2863_v32 = vpop.f32.mrb[14].mxu1  ;;  %v945_v34 = vpop.f32.mrb[15].mxu0  ;;  %v1357_v1 = vsel %vm3901_vm7, %v2807_v31, 0.0  ;;  %v1391_v25 = vld [vmem:[#allocation2 + $0x8] sm:$0xff] }
 0x17c   : > { %v1303_v36 = vld [vmem:[#allocation2 + $0x49] sm:$0xff]  ;;  %v1304_v37 = vld [vmem:[#allocation2 + $0x51] sm:$0xff]  ;;  %1293 = vst [vmem:[#allocation2 + $0x78] sm:$0xff] %v2863_v32  ;;  %v1107_v39 = vpop.f32.mrb[15].mxu1 }
 0x17d   : > { %v1367_v41 = vadd.f32 %v1351_v35, %v1303_v36  ;;  %v1368_v42 = vadd.f32 %v1304_v37, %v925_v2  ;;  %1292 = vst [vmem:[#allocation2 + $0x70] sm:$0xff] %v1107_v39 }
 0x17e   : > { %v2898_v44 = vpop.f32.mrb[16].mxu0 }
 0x17f   : > { %1383 = vst [vmem:[#allocation2 + $0x49] sm:$0xff] %v1367_v41  ;;  %1384 = vst [vmem:[#allocation2 + $0x51] sm:$0xff] %v1368_v42  ;;  %v1456_v48 = vrot.slane %v2898_v44, 1  ;;  %v1199_v49 = vpop.f32.mrb[17].mxu0  ;;  %v652_v42 = vand.u32 15, %v3846_v45 }
 0x180   : > { %v1305_v51 = vld [vmem:[#allocation2 + $0x59] sm:$0xff]  ;;  %v1306_v52 = vld [vmem:[#allocation2 + $0x61] sm:$0xff]  ;;  %v1455_v54 = vrot.slane %v1199_v49, 1  ;;  %v1954_v49 = vld [vmem:[#allocation8 + $0x110] sm:$0xff] }
 0x181   : > { %v1369_v13 = vadd.f32 %v1353_v50, %v1305_v51  ;;  %v1370_v56 = vadd.f32 %v1306_v52, %v935_v18  ;;  %v1955_v50 = vld [vmem:[#allocation8 + $0x118] sm:$0xff]  ;;  %vm4000_vm13 = vcmp.ne.s32.totalorder %v652_v42, 15 }
 0x182   : > { %v1457_v60 = vsel %vm4344_vm6, %v1455_v54, %v1456_v48  ;;  %v2901_v61 = vpop.f32.mrb[18].mxu0  ;;  %v1393_v51 = vld [vmem:[#allocation2 + $0x18] sm:$0xff]  ;;  %v1398_v38 = vld [vmem:[#allocation2 + $0x40] sm:$0xff] }
 0x183   : > { %1385 = vst [vmem:[#allocation2 + $0x59] sm:$0xff] %v1369_v13  ;;  %1386 = vst [vmem:[#allocation2 + $0x61] sm:$0xff] %v1370_v56  ;;  %v1309_v2 = vld [vmem:[#allocation2 + $0x79] sm:$0x7f]  ;;  %v1518_v3 = vadd.f32 %v1457_v60, %v1390_v58  ;;  %v1460_v4 = vrot.slane %v2901_v61, 1  ;;  %v1209_v19 = vpop.f32.mrb[19].mxu0 }
 0x184   : > { %v1373_v7 = vadd.f32 %v1357_v1, %v1309_v2  ;;  %v1307_v9 = vld [vmem:[#allocation2 + $0x69] sm:$0xff]  ;;  %v1308_v11 = vld [vmem:[#allocation2 + $0x71] sm:$0xff]  ;;  %v1458_v14 = vrot.slane %v1209_v19, 1  ;;  %v666_v1 = vand.u32 15, %v3862_v62 }
 0x185   : > { %v1371_v18 = vadd.f32 %v1355_v6, %v1307_v9  ;;  %v1372_v20 = vadd.f32 %v1308_v11, %v945_v34  ;;  %1534 = vst [vmem:[#allocation2] sm:$0xff] %v1518_v3  ;;  %v1573_v22 = vmul.f32 %v3914_v63, %v1518_v3  ;;  %v624_v34 = vand.u32 15, %v3830_v26  ;;  %v1396_v19 = vld [vmem:[#allocation2 + $0x30] sm:$0xff] }
 0x186   : > { %1389 = vst [vmem:[#allocation2 + $0x79] sm:$0x7f] %v1373_v7  ;;  %v1459_v24 = vsel %vm4344_vm6, %v1456_v48, %v1458_v14  ;;  %v1461_v16 = vsel %vm4344_vm6, %v1458_v14, %v1460_v4  ;;  %v2904_v12 = vpop.f32.mrb[20].mxu0  ;;  %v3962_v3 = vpack.c.bf16 %v1955_v50, %v1954_v49  ;;  %v1959_v49 = vld [vmem:[#allocation8 + $0x138] sm:$0xff]  ;;  %vm4027_vm14 = vcmp.ne.s32.totalorder %v666_v1, 15 }
 0x187   : > { %1387 = vst [vmem:[#allocation2 + $0x69] sm:$0xff] %v1371_v18  ;;  %1388 = vst [vmem:[#allocation2 + $0x71] sm:$0xff] %v1372_v20  ;;  %v1503_v27 = vsel %vm3918_vm9, %v1459_v24, 0.0  ;;  %v1520_v28 = vadd.f32 %v1461_v16, %v1392_v23  ;;  %v1464_v29 = vrot.slane %v2904_v12, 1  ;;  %v1219_v31 = vpop.f32.mrb[21].mxu0  ;;  %v1596_v32 = vadd.f32 %v3928_v17, %v1573_v22  ;;  %v1956_v18 = vld [vmem:[#allocation8 + $0x120] sm:$0xff] }
 0x188   : > { %v1519_v35 = vadd.f32 %v1503_v27, %v1391_v25  ;;  %v1462_v37 = vrot.slane %v1219_v31, 1  ;;  %vm3954_vm11 = vcmp.ne.s32.totalorder %v624_v34, 15  ;;  %v1957_v20 = vld [vmem:[#allocation8 + $0x128] sm:$0xff]  ;;  %v1397_v50 = vld [vmem:[#allocation2 + $0x38] sm:$0xff] }
 0x189   : > { %1536 = vst [vmem:[#allocation2 + $0x10] sm:$0xff] %v1520_v28  ;;  %v3942_v39 = vmax.f32 %v1596_v32, 0.0  ;;  %v1575_v41 = vmul.f32 %v3914_v63, %v1520_v28  ;;  %v1395_v22 = vld [vmem:[#allocation2 + $0x28] sm:$0xff]  ;;  %v680_v32 = vand.u32 15, %v3877_v15 }
 0x18a   : > { %1535 = vst [vmem:[#allocation2 + $0x8] sm:$0xff] %v1519_v35  ;;  %v1463_v44 = vsel %vm4344_vm6, %v1460_v4, %v1462_v37  ;;  %v1465_v26 = vsel %vm4344_vm6, %v1462_v37, %v1464_v29  ;;  %v2907_v47 = vpop.f32.mrb[22].mxu0  ;;  %v1574_v48 = vmul.f32 %v3914_v63, %v1519_v35  ;;  %v3985_v35 = vpack.c.bf16 %v1957_v20, %v1956_v18  ;;  %v1960_v18 = vld [vmem:[#allocation8 + $0x140] sm:$0xff]  ;;  %v1961_v20 = vld [vmem:[#allocation8 + $0x148] sm:$0xff] }
 0x18b   : > { %v1505_v30 = vsel %vm3937_vm10, %v1463_v44, 0.0  ;;  %v1522_v52 = vadd.f32 %v1465_v26, %v1394_v43  ;;  %v1468_v54 = vrot.slane %v2907_v47, 1  ;;  %v1229_v13 = vpop.f32.mrb[23].mxu0  ;;  %2952 = vmatprep.mubr.f32.mxu1 %v3942_v39  ;;  %3008 = vmatprep.mubr.f32.mxu0 %v3942_v39  ;;  %v1598_v56 = vadd.f32 %v3928_v17, %v1575_v41 }
 0x18c   : > { %v1521_v57 = vadd.f32 %v1505_v30, %v1393_v51  ;;  %v1466_v60 = vrot.slane %v1229_v13, 1  ;;  %v1597_v61 = vadd.f32 %v3928_v17, %v1574_v48  ;;  %v1958_v48 = vld [vmem:[#allocation8 + $0x130] sm:$0xff]  ;;  %v3264_v1 = vpack.c.bf16 %v1961_v20, %v1960_v18 }
 0x18d   : > { %1538 = vst [vmem:[#allocation2 + $0x20] sm:$0xff] %v1522_v52  ;;  %v3960_v2 = vmax.f32 %v1598_v56, 0.0  ;;  %v1577_v4 = vmul.f32 %v3914_v63, %v1522_v52  ;;  %v4012_v45 = vpack.c.bf16 %v1959_v49, %v1958_v48 }
 0x18e   : > { %1537 = vst [vmem:[#allocation2 + $0x18] sm:$0xff] %v1521_v57  ;;  %v1467_v6 = vsel %vm4344_vm6, %v1464_v29, %v1466_v60  ;;  %v1469_v7 = vsel %vm4344_vm6, %v1466_v60, %v1468_v54  ;;  %v2910_v9 = vpop.f32.mrb[24].mxu0  ;;  %v3967_v11 = vmax.f32 %v1597_v61, 0.0  ;;  %v1576_v14 = vmul.f32 %v3914_v63, %v1521_v57 }
 0x18f   : > { %v1507_v23 = vsel %vm3954_vm11, %v1467_v6, 0.0  ;;  %v1524_v24 = vadd.f32 %v1469_v7, %v1396_v19  ;;  %v1472_v16 = vrot.slane %v2910_v9, 1  ;;  %v1239_v12 = vpop.f32.mrb[25].mxu0  ;;  %v1600_v25 = vadd.f32 %v3928_v17, %v1577_v4  ;;  %v1400_v19 = vld [vmem:[#allocation2 + $0x50] sm:$0xff] }
 0x190   : > { %v1523_v27 = vadd.f32 %v1507_v23, %v1395_v22  ;;  %v1470_v29 = vrot.slane %v1239_v12, 1  ;;  %2953 = vmatmul.mubr.f32.vlgmr.msra.gmra.mrb[16].mxu1 %v3967_v11  ;;  %3009 = vmatmul.mubr.f32.vlgmr.msra.gmra.mrb[32].mxu0 %v3967_v11  ;;  %v1599_v31 = vadd.f32 %v3928_v17, %v1576_v14  ;;  %v694_v61 = vand.u32 15, %v3873_v8  ;;  %v1399_v22 = vld [vmem:[#allocation2 + $0x48] sm:$0xff] }
 0x191   : > { %1540 = vst [vmem:[#allocation2 + $0x30] sm:$0xff] %v1524_v24  ;;  %2955 = vmatprep.mubr.f32.mxu1 %v3960_v2  ;;  %3011 = vmatprep.mubr.f32.mxu0 %v3960_v2  ;;  %v3983_v34 = vmax.f32 %v1600_v25, 0.0  ;;  %v1579_v37 = vmul.f32 %v3914_v63, %v1524_v24 }
 0x192   : > { %1539 = vst [vmem:[#allocation2 + $0x28] sm:$0xff] %v1523_v27  ;;  %v1471_v41 = vsel %vm4344_vm6, %v1468_v54, %v1470_v29  ;;  %v1473_v43 = vsel %vm4344_vm6, %v1470_v29, %v1472_v16  ;;  %v2913_v44 = vpop.f32.mrb[26].mxu0  ;;  %3251 = vmatpush3.bf16.msra.mxu1 %v3816_v10  ;;  %v3991_v26 = vmax.f32 %v1599_v31, 0.0  ;;  %v1578_v47 = vmul.f32 %v3914_v63, %v1523_v27 }
 0x193   : > { %v1509_v51 = vsel %vm3973_vm12, %v1471_v41, 0.0  ;;  %v1526_v30 = vadd.f32 %v1473_v43, %v1398_v38  ;;  %v1476_v52 = vrot.slane %v2913_v44, 1  ;;  %v1249_v13 = vpop.f32.mrb[27].mxu0  ;;  %3253 = vmatprep.subr.bf16.mxu1 %v3962_v3  ;;  %v1602_v54 = vadd.f32 %v3928_v17, %v1579_v37  ;;  %v1402_v41 = vld [vmem:[#allocation2 + $0x60] sm:$0xff] }
 0x194   : > { %v1525_v56 = vadd.f32 %v1509_v51, %v1397_v50  ;;  %v4382_v10 = vmov 0  ;;  %v1474_v57 = vrot.slane %v1249_v13, 1  ;;  %2956 = vmatmul.mubr.f32.gmra.mrb[18].mxu1 %v3991_v26  ;;  %3012 = vmatmul.mubr.f32.gmra.mrb[34].mxu0 %v3991_v26  ;;  %v1601_v60 = vadd.f32 %v3928_v17, %v1578_v47  ;;  %v1962_v50 = vld [vmem:[#allocation8 + $0x150] sm:$0xff]  ;;  %v1963_v51 = vld [vmem:[#allocation8 + $0x158] sm:$0xff] }
 0x195   : > { %v4383_v10 = vsel %vm4000_vm13, 4294967295, %v4382_v10  ;;  %1542 = vst [vmem:[#allocation2 + $0x40] sm:$0xff] %v1526_v30  ;;  %2958 = vmatprep.mubr.f32.mxu1 %v3983_v34  ;;  %3014 = vmatprep.mubr.f32.mxu0 %v3983_v34  ;;  %v4010_v4 = vmax.f32 %v1602_v54, 0.0  ;;  %v1581_v42 = vmul.f32 %v3914_v63, %v1526_v30  ;;  %vm4034_vm15 = vcmp.ne.s32.totalorder %v694_v61, 15  ;;  %v1401_v30 = vld [vmem:[#allocation2 + $0x58] sm:$0xff] }
 0x196   : > { %1541 = vst [vmem:[#allocation2 + $0x38] sm:$0xff] %v1525_v56  ;;  %v1475_v6 = vsel %vm4344_vm6, %v1472_v16, %v1474_v57  ;;  %v1477_v7 = vsel %vm4344_vm6, %v1474_v57, %v1476_v52  ;;  %v2916_v9 = vpop.f32.mrb[28].mxu0  ;;  %3255 = vmatpush3.bf16.msra.mxu1 %v3962_v3  ;;  %v4018_v8 = vmax.f32 %v1601_v60, 0.0  ;;  %v1580_v14 = vmul.f32 %v3914_v63, %v1525_v56 }
 0x197   : > { %v1511_v23 = vsel %vm4000_vm13, %v1475_v6, 0.0  ;;  %v1528_v24 = vadd.f32 %v1477_v7, %v1400_v19  ;;  %v1480_v12 = vrot.slane %v2916_v9, 1  ;;  %v1259_v25 = vpop.f32.mrb[29].mxu0  ;;  %3257 = vmatprep.subr.bf16.mxu1 %v3985_v35  ;;  %v1604_v16 = vadd.f32 %v3928_v17, %v1581_v42  ;;  %v1405_v19 = vld [vmem:[#allocation2 + $0x78] sm:$0x7f]  ;;  %v1404_v9 = vld [vmem:[#allocation2 + $0x70] sm:$0xff] }
 0x198   : > { %v1527_v27 = vadd.f32 %v1511_v23, %v1399_v22  ;;  %v4384_v3 = vmov 0  ;;  %v1478_v29 = vrot.slane %v1259_v25, 1  ;;  %2959 = vmatmul.mubr.f32.gmra.mrb[20].mxu1 %v4018_v8  ;;  %3015 = vmatmul.mubr.f32.gmra.mrb[36].mxu0 %v4018_v8  ;;  %v1603_v31 = vadd.f32 %v3928_v17, %v1580_v14  ;;  %v1403_v22 = vld [vmem:[#allocation2 + $0x68] sm:$0xff] }
 0x199   : > { %v4385_v3 = vsel %vm4027_vm14, 4294967295, %v4384_v3  ;;  %1544 = vst [vmem:[#allocation2 + $0x50] sm:$0xff] %v1528_v24  ;;  %2961 = vmatprep.mubr.f32.mxu1 %v4010_v4  ;;  %3017 = vmatprep.mubr.f32.mxu0 %v4010_v4  ;;  %v4040_v62 = vmax.f32 %v1604_v16, 0.0  ;;  %v1583_v38 = vmul.f32 %v3914_v63, %v1528_v24  ;;  %v3268_v15 = vpack.c.bf16 %v1963_v51, %v1962_v50  ;;  %v1966_v51 = vld [vmem:[#allocation8 + $0x170] sm:$0xff] }
 0x19a   : > { %1543 = vst [vmem:[#allocation2 + $0x48] sm:$0xff] %v1527_v27  ;;  %v1479_v43 = vsel %vm4344_vm6, %v1476_v52, %v1478_v29  ;;  %v1481_v44 = vsel %vm4344_vm6, %v1478_v29, %v1480_v12  ;;  %v2919_v47 = vpop.f32.mrb[30].mxu0  ;;  %3259 = vmatpush3.bf16.msra.mxu1 %v3985_v35  ;;  %v4046_v48 = vmax.f32 %v1603_v31, 0.0  ;;  %v1582_v49 = vmul.f32 %v3914_v63, %v1527_v27  ;;  %v1964_v29 = vld [vmem:[#allocation8 + $0x160] sm:$0xff]  ;;  %v1965_v31 = vld [vmem:[#allocation8 + $0x168] sm:$0xff] }
 0x19b   : > { %v1513_v13 = vsel %vm4027_vm14, %v1479_v43, 0.0  ;;  %v1530_v54 = vadd.f32 %v1481_v44, %v1402_v41  ;;  %v1484_v56 = vrot.slane %v2919_v47, 1  ;;  %v1269_v57 = vpop.f32.mrb[31].mxu0  ;;  %3261 = vmatprep.subr.bf16.mxu1 %v4012_v45  ;;  %v1606_v52 = vadd.f32 %v3928_v17, %v1583_v38 }
 0x19c   : > { %v1529_v60 = vadd.f32 %v1513_v13, %v1401_v30  ;;  %vm4055_vm6 = vcmp.ne.s32.totalorder %v680_v32, 15  ;;  %v1482_v61 = vrot.slane %v1269_v57, 1  ;;  %2962 = vmatmul.mubr.f32.gmra.mrb[22].mxu1 %v4046_v48  ;;  %3018 = vmatmul.mubr.f32.gmra.mrb[38].mxu0 %v4046_v48  ;;  %v1605_v42 = vadd.f32 %v3928_v17, %v1582_v49  ;;  %v1967_v30 = vld [vmem:[#allocation8 + $0x178] sm:$0xff] }
 0x19d   : > { %1546 = vst [vmem:[#allocation2 + $0x60] sm:$0xff] %v1530_v54  ;;  %v1517_v6 = vsel %vm4034_vm15, %v1484_v56, 0.0  ;;  %2964 = vmatprep.mubr.f32.mxu1 %v4040_v62  ;;  %3020 = vmatprep.mubr.f32.mxu0 %v4040_v62  ;;  %v1585_v32 = vmul.f32 %v3914_v63, %v1530_v54  ;;  %vm4390_vm14 = vcmask 1046528   ;;  %v1622_v25 = vmax.f32 %v1606_v52, 0.0 }
 0x19e   : > { %1545 = vst [vmem:[#allocation2 + $0x58] sm:$0xff] %v1529_v60  ;;  %v1533_v7 = vadd.f32 %v1517_v6, %v1405_v19  ;;  %v1483_v14 = vsel %vm4390_vm14, %v1480_v12, %v1482_v61  ;;  %vm4391_vm13 = vmmov %vm4390_vm14  ;;  %3263 = vmatpush3.bf16.msra.mxu1 %v4012_v45  ;;  %v1621_v20 = vmax.f32 %v1605_v42, 0.0  ;;  %v1584_v16 = vmul.f32 %v3914_v63, %v1529_v60 }
 0x19f   : > { %v1485_v18 = vsel %vm4391_vm13, %v1482_v61, %v1484_v56  ;;  %v1515_v23 = vsel %vm4055_vm6, %v1483_v14, 0.0  ;;  %3265 = vmatprep.subr.bf16.mxu1 %v3264_v1  ;;  %v1608_v12 = vadd.f32 %v3928_v17, %v1585_v32  ;;  %v3272_v49 = vpack.c.bf16 %v1965_v31, %v1964_v29 }
 0x1a0   : > { %v1532_v24 = vadd.f32 %v1485_v18, %v1404_v9  ;;  %1549 = vst [vmem:[#allocation2 + $0x78] sm:$0x7f] %v1533_v7  ;;  %v1531_v27 = vadd.f32 %v1515_v23, %v1403_v22  ;;  %2965 = vmatmul.mubr.f32.gmra.mrb[24].mxu1 %v1621_v20  ;;  %3021 = vmatmul.mubr.f32.gmra.mrb[40].mxu0 %v1621_v20 }
 0x1a1   : > { %2967 = vmatprep.mubr.f32.mxu1 %v1622_v25  ;;  %3023 = vmatprep.mubr.f32.mxu0 %v1622_v25  ;;  %v1607_v45 = vadd.f32 %v3928_v17, %v1584_v16  ;;  %v1624_v44 = vmax.f32 %v1608_v12, 0.0  ;;  %v3276_v57 = vpack.c.bf16 %v1967_v30, %v1966_v51 }
 0x1a2   : > { %1548 = vst [vmem:[#allocation2 + $0x70] sm:$0xff] %v1532_v24  ;;  %v1587_v38 = vmul.f32 %v3914_v63, %v1532_v24  ;;  %1547 = vst [vmem:[#allocation2 + $0x68] sm:$0xff] %v1531_v27  ;;  %3267 = vmatpush3.bf16.msra.mxu1 %v3264_v1  ;;  %v1586_v41 = vmul.f32 %v3914_v63, %v1531_v27 }
 0x1a3   : > { %v1623_v43 = vmax.f32 %v1607_v45, 0.0  ;;  %3269 = vmatprep.subr.bf16.mxu1 %v3268_v15 }
 0x1a4   : > { %v1609_v47 = vadd.f32 %v3928_v17, %v1586_v41  ;;  %v1610_v50 = vadd.f32 %v3928_v17, %v1587_v38 }
 0x1a5   : > { %2968 = vmatmul.mubr.f32.gmra.mrb[26].mxu1 %v1623_v43  ;;  %3024 = vmatmul.mubr.f32.gmra.mrb[42].mxu0 %v1623_v43 }
 0x1a6   : > { %2970 = vmatprep.mubr.f32.mxu1 %v1624_v44  ;;  %3026 = vmatprep.mubr.f32.mxu0 %v1624_v44  ;;  %v1625_v13 = vmax.f32 %v1609_v47, 0.0  ;;  %v1626_v1 = vmax.f32 %v1610_v50, 0.0 }
 0x1a7   : > { %3271 = vmatpush3.bf16.msra.mxu1 %v3268_v15  ;;  %v1565_v54 = vld [vmem:[#allocation2 + $0x78] sm:$0xff] }
 0x1a8   : > { %3273 = vmatprep.subr.bf16.mxu1 %v3272_v49  ;;  %v1588_v56 = vmul.f32 %v3914_v63, %v1565_v54 }
 0x1a9   : > { %2971 = vmatmul.mubr.f32.gmra.mrb[28].mxu1 %v1625_v13  ;;  %3027 = vmatmul.mubr.f32.gmra.mrb[44].mxu0 %v1625_v13 }
 0x1aa   : > { %2973 = vmatprep.mubr.f32.mxu1 %v1626_v1  ;;  %3029 = vmatprep.mubr.f32.mxu0 %v1626_v1  ;;  %v1611_v52 = vadd.f32 %v3928_v17, %v1588_v56 }
 0x1ab   : > { %3275 = vmatpush3.bf16.msra.mxu1 %v3272_v49 }
 0x1ac   : > { %v1627_v60 = vmax.f32 %v1611_v52, 0.0  ;;  %3277 = vmatprep.subr.bf16.mxu1 %v3276_v57 }
 0x1ae   : > { %2974 = vmatmul.mubr.f32.gmra.mrb[30].mxu1 %v1627_v60  ;;  %3030 = vmatmul.mubr.f32.gmra.mrb[46].mxu0 %v1627_v60 }
 0x1af   : > { %3279 = vmatpush3.bf16.msra.mxu1 %v3276_v57  ;;  %3064 = vmatprep.mubr.f32.mxu1 %v3942_v39 }
 0x1b2   : > { %3065 = vmatmul.mubr.f32.vlgmr.msra.gmra.mrb[32].mxu1 %v3967_v11 }
 0x1b3   : > { %3067 = vmatprep.mubr.f32.mxu1 %v3960_v2 }
 0x1b6   : > { %3068 = vmatmul.mubr.f32.gmra.mrb[34].mxu1 %v3991_v26 }
 0x1b7   : > { %3070 = vmatprep.mubr.f32.mxu1 %v3983_v34 }
 0x1ba   : > { %3071 = vmatmul.mubr.f32.gmra.mrb[36].mxu1 %v4018_v8 }
 0x1bb   : > { %3073 = vmatprep.mubr.f32.mxu1 %v4010_v4 }
 0x1be   : > { %3074 = vmatmul.mubr.f32.gmra.mrb[38].mxu1 %v4046_v48 }
 0x1bf   : > { %3076 = vmatprep.mubr.f32.mxu1 %v4040_v62 }
 0x1c2   : > { %3077 = vmatmul.mubr.f32.gmra.mrb[40].mxu1 %v1621_v20 }
 0x1c3   : > { %3079 = vmatprep.mubr.f32.mxu1 %v1622_v25 }
 0x1c6   : > { %3080 = vmatmul.mubr.f32.gmra.mrb[42].mxu1 %v1623_v43 }
 0x1c7   : > { %3082 = vmatprep.mubr.f32.mxu1 %v1624_v44 }
 0x1ca   : > { %3083 = vmatmul.mubr.f32.gmra.mrb[44].mxu1 %v1625_v13 }
 0x1cb   : > { %3085 = vmatprep.mubr.f32.mxu1 %v1626_v1 }
 0x1ce   : > { %3086 = vmatmul.mubr.f32.gmra.mrb[46].mxu1 %v1627_v60 }
 0x263   : > { %v2954_v63 = vpop.f32.mrb[16].mxu1  ;;  %v3010_v17 = vpop.f32.mrb[32].mxu0 }
 0x264   : > { %2114 = vst [vmem:[%s4092_s10 + $0x8] sm:$0xff] %v3010_v17  ;;  %v1710_v39 = vpop.f32.mrb[17].mxu1  ;;  %v1872_v2 = vpop.f32.mrb[33].mxu0  ;;  %v2146_v32 = vsel %vm3835_vm0, %v2954_v63, 0.0  ;;  %vm4392_vm0 = vmmov %vm4391_vm13 }
 0x265   : > { %2113 = vst [vmem:[%s4092_s10] sm:$0xff] %v1872_v2  ;;  %vm4404_vm13 = vmmov %vm4392_vm0 }
 0x266   : > { %vm4405_vm14 = vmmov %vm4392_vm0 }
 0x267   : > { %v2957_v11 = vpop.f32.mrb[18].mxu1  ;;  %v3013_v34 = vpop.f32.mrb[34].mxu0 }
 0x268   : > { %2116 = vst [vmem:[%s4092_s10 + $0x18] sm:$0xff] %v3013_v34  ;;  %v1720_v26 = vpop.f32.mrb[19].mxu1  ;;  %v1882_v4 = vpop.f32.mrb[35].mxu0  ;;  %v2148_v24 = vsel %vm3848_vm1, %v2957_v11, 0.0  ;;  %vm4393_vm1 = vmmov %vm4392_vm0 }
 0x269   : > { %2115 = vst [vmem:[%s4092_s10 + $0x10] sm:$0xff] %v1882_v4 }
 0x26b   : > { %v2960_v8 = vpop.f32.mrb[20].mxu1  ;;  %v3016_v62 = vpop.f32.mrb[36].mxu0 }
 0x26c   : > { %v2129_v48 = vld [vmem:[%s4092_s10 + $0x1] sm:$0xff]  ;;  %2118 = vst [vmem:[%s4092_s10 + $0x28] sm:$0xff] %v3016_v62  ;;  %v1730_v61 = vpop.f32.mrb[21].mxu1  ;;  %v1892_v42 = vpop.f32.mrb[37].mxu0  ;;  %v2150_v46 = vsel %vm3857_vm2, %v2960_v8, 0.0  ;;  %vm4394_vm2 = vmmov %vm4392_vm0 }
 0x26d   : > { %v2161_v19 = vadd.f32 %v2129_v48, %v1710_v39  ;;  %2117 = vst [vmem:[%s4092_s10 + $0x20] sm:$0xff] %v1892_v42 }
 0x26f   : > { %2177 = vst [vmem:[%s4092_s10 + $0x1] sm:$0xff] %v2161_v19  ;;  %v2963_v6 = vpop.f32.mrb[22].mxu1  ;;  %v3019_v15 = vpop.f32.mrb[38].mxu0 }
 0x270   : > { %v2130_v7 = vld [vmem:[%s4092_s10 + $0x9] sm:$0xff]  ;;  %v2131_v9 = vld [vmem:[%s4092_s10 + $0x11] sm:$0xff]  ;;  %2120 = vst [vmem:[%s4092_s10 + $0x38] sm:$0xff] %v3019_v15  ;;  %v1740_v14 = vpop.f32.mrb[23].mxu1  ;;  %v1902_v18 = vpop.f32.mrb[39].mxu0  ;;  %v2152_v59 = vsel %vm3866_vm3, %v2963_v6, 0.0  ;;  %vm4395_vm3 = vmmov %vm4392_vm0 }
 0x271   : > { %v2162_v20 = vadd.f32 %v2146_v32, %v2130_v7  ;;  %v2163_v22 = vadd.f32 %v2131_v9, %v1720_v26  ;;  %2119 = vst [vmem:[%s4092_s10 + $0x30] sm:$0xff] %v1902_v18  ;;  %v4151_v15 = vld [vmem:[%s4337_s5] ss:$0 sm:$0xff] }
 0x273   : > { %2178 = vst [vmem:[%s4092_s10 + $0x9] sm:$0xff] %v2162_v20  ;;  %2179 = vst [vmem:[%s4092_s10 + $0x11] sm:$0xff] %v2163_v22  ;;  %v2966_v23 = vpop.f32.mrb[24].mxu1  ;;  %v3022_v33 = vpop.f32.mrb[40].mxu0 }
 0x274   : > { %v2132_v25 = vld [vmem:[%s4092_s10 + $0x19] sm:$0xff]  ;;  %v2133_v16 = vld [vmem:[%s4092_s10 + $0x21] sm:$0xff]  ;;  %2122 = vst [vmem:[%s4092_s10 + $0x48] sm:$0xff] %v3022_v33  ;;  %v1750_v27 = vpop.f32.mrb[25].mxu1  ;;  %v1912_v12 = vpop.f32.mrb[41].mxu0  ;;  %v2154_v0 = vsel %vm3884_vm4, %v2966_v23, 0.0  ;;  %vm4396_vm4 = vmmov %vm4392_vm0 }
 0x275   : > { %v2164_v45 = vadd.f32 %v2148_v24, %v2132_v25  ;;  %v2165_v29 = vadd.f32 %v2133_v16, %v1730_v61  ;;  %2121 = vst [vmem:[%s4092_s10 + $0x40] sm:$0xff] %v1912_v12 }
 0x276   : > { %v2193_v7 = vld [vmem:[%s4092_s10] sm:$0xff] }
 0x277   : > { %2180 = vst [vmem:[%s4092_s10 + $0x19] sm:$0xff] %v2164_v45  ;;  %2181 = vst [vmem:[%s4092_s10 + $0x21] sm:$0xff] %v2165_v29 }
 0x278   : > { %v2134_v31 = vld [vmem:[%s4092_s10 + $0x29] sm:$0xff]  ;;  %v2135_v38 = vld [vmem:[%s4092_s10 + $0x31] sm:$0xff]  ;;  %v2969_v41 = vpop.f32.mrb[26].mxu1  ;;  %v3025_v43 = vpop.f32.mrb[42].mxu0 }
 0x279   : > { %v2166_v44 = vadd.f32 %v2150_v46, %v2134_v31  ;;  %v2167_v47 = vadd.f32 %v2135_v38, %v1740_v14  ;;  %2124 = vst [vmem:[%s4092_s10 + $0x58] sm:$0xff] %v3025_v43  ;;  %v1760_v49 = vpop.f32.mrb[27].mxu1  ;;  %v1922_v50 = vpop.f32.mrb[43].mxu0  ;;  %v2156_v21 = vsel %vm3893_vm5, %v2969_v41, 0.0  ;;  %vm4397_vm5 = vmmov %vm4392_vm0 }
 0x27a   : > { %2123 = vst [vmem:[%s4092_s10 + $0x50] sm:$0xff] %v1922_v50  ;;  %v2195_v45 = vld [vmem:[%s4092_s10 + $0x10] sm:$0xff]  ;;  %v2194_v41 = vld [vmem:[%s4092_s10 + $0x8] sm:$0xff] }
 0x27b   : > { %2182 = vst [vmem:[%s4092_s10 + $0x29] sm:$0xff] %v2166_v44  ;;  %2183 = vst [vmem:[%s4092_s10 + $0x31] sm:$0xff] %v2167_v47 }
 0x27c   : > { %v2136_v51 = vld [vmem:[%s4092_s10 + $0x39] sm:$0xff]  ;;  %v2137_v30 = vld [vmem:[%s4092_s10 + $0x41] sm:$0xff]  ;;  %v2972_v13 = vpop.f32.mrb[28].mxu1  ;;  %v3028_v54 = vpop.f32.mrb[44].mxu0 }
 0x27d   : > { %v2168_v1 = vadd.f32 %v2152_v59, %v2136_v51  ;;  %v2169_v56 = vadd.f32 %v2137_v30, %v1750_v27  ;;  %2126 = vst [vmem:[%s4092_s10 + $0x68] sm:$0xff] %v3028_v54  ;;  %v1770_v57 = vpop.f32.mrb[29].mxu1  ;;  %v1932_v52 = vpop.f32.mrb[45].mxu0  ;;  %v2158_v18 = vsel %vm3905_vm8, %v2972_v13, 0.0  ;;  %v4165_v27 = vld [vmem:[%s4338_s6] ss:$0 sm:$0xff]  ;;  %vm4399_vm8 = vmmov %vm4392_vm0 }
 0x27e   : > { %2125 = vst [vmem:[%s4092_s10 + $0x60] sm:$0xff] %v1932_v52  ;;  %v3351_v51 = vld [vmem:[%s3760_s13] sm:$0xff] }
 0x27f   : > { %2184 = vst [vmem:[%s4092_s10 + $0x39] sm:$0xff] %v2168_v1  ;;  %2185 = vst [vmem:[%s4092_s10 + $0x41] sm:$0xff] %v2169_v56  ;;  %v2197_v1 = vld [vmem:[%s4092_s10 + $0x20] sm:$0xff] }
 0x281   : > { %v2138_v60 = vld [vmem:[%s4092_s10 + $0x49] sm:$0xff]  ;;  %v2139_v63 = vld [vmem:[%s4092_s10 + $0x51] sm:$0xff]  ;;  %v2975_v17 = vpop.f32.mrb[30].mxu1  ;;  %v3031_v39 = vpop.f32.mrb[46].mxu0 }
 0x282   : > { %v2170_v2 = vadd.f32 %v2154_v0, %v2138_v60  ;;  %v2171_v11 = vadd.f32 %v2139_v63, %v1760_v49  ;;  %2128 = vst [vmem:[%s4092_s10 + $0x78] sm:$0xff] %v3031_v39  ;;  %v1780_v34 = vpop.f32.mrb[31].mxu1  ;;  %v1942_v26 = vpop.f32.mrb[47].mxu0  ;;  %v2160_v40 = vsel %vm3901_vm7, %v2975_v17, 0.0  ;;  %v2196_v60 = vld [vmem:[%s4092_s10 + $0x18] sm:$0xff]  ;;  %v2199_v36 = vld [vmem:[%s4092_s10 + $0x30] sm:$0xff]  ;;  %vm4398_vm7 = vmmov %vm4392_vm0 }
 0x283   : > { %2127 = vst [vmem:[%s4092_s10 + $0x70] sm:$0xff] %v1942_v26 }
 0x284   : > { %2186 = vst [vmem:[%s4092_s10 + $0x49] sm:$0xff] %v2170_v2  ;;  %2187 = vst [vmem:[%s4092_s10 + $0x51] sm:$0xff] %v2171_v11 }
 0x285   : > { %v2140_v4 = vld [vmem:[%s4092_s10 + $0x59] sm:$0xff]  ;;  %v2141_v8 = vld [vmem:[%s4092_s10 + $0x61] sm:$0xff]  ;;  %v3066_v62 = vpop.f32.mrb[32].mxu1 }
 0x286   : > { %v2172_v48 = vadd.f32 %v2156_v21, %v2140_v4  ;;  %v2173_v61 = vadd.f32 %v2141_v8, %v1770_v57  ;;  %v2226_v42 = vrot.slane %v3066_v62, 1  ;;  %v2034_v19 = vpop.f32.mrb[33].mxu1  ;;  %v3352_v21 = vld [vmem:[%s3760_s13 + $0x10] sm:$0xff]  ;;  %v3353_v62 = vld [vmem:[%s3760_s13 + $0x8] sm:$0xff] }
 0x287   : > { %v2225_v6 = vrot.slane %v2034_v19, 1 }
 0x288   : > { %2188 = vst [vmem:[%s4092_s10 + $0x59] sm:$0xff] %v2172_v48  ;;  %2189 = vst [vmem:[%s4092_s10 + $0x61] sm:$0xff] %v2173_v61 }
 0x289   : > { %v2144_v32 = vld [vmem:[%s4092_s10 + $0x79] sm:$0x7f]  ;;  %v2227_v9 = vsel %vm4392_vm0, %v2225_v6, %v2226_v42  ;;  %v3069_v14 = vpop.f32.mrb[34].mxu1 }
 0x28a   : > { %v2176_v20 = vadd.f32 %v2160_v40, %v2144_v32  ;;  %v2142_v22 = vld [vmem:[%s4092_s10 + $0x69] sm:$0xff]  ;;  %v2143_v23 = vld [vmem:[%s4092_s10 + $0x71] sm:$0xff]  ;;  %v2288_v33 = vadd.f32 %v2227_v9, %v2193_v7  ;;  %v2230_v24 = vrot.slane %v3069_v14, 1  ;;  %v2044_v53 = vpop.f32.mrb[35].mxu1 }
 0x28b   : > { %v2174_v25 = vadd.f32 %v2158_v18, %v2142_v22  ;;  %v2175_v16 = vadd.f32 %v2143_v23, %v1780_v34  ;;  %v2228_v12 = vrot.slane %v2044_v53, 1  ;;  %v2198_v7 = vld [vmem:[%s4092_s10 + $0x28] sm:$0xff] }
 0x28c   : > { %2192 = vst [vmem:[%s4092_s10 + $0x79] sm:$0x7f] %v2176_v20  ;;  %v2343_v55 = vmul.f32 %v4151_v15, %v2288_v33 }
 0x28d   : > { %2190 = vst [vmem:[%s4092_s10 + $0x69] sm:$0xff] %v2174_v25  ;;  %2191 = vst [vmem:[%s4092_s10 + $0x71] sm:$0xff] %v2175_v16  ;;  %v2229_v29 = vsel %vm4393_vm1, %v2226_v42, %v2228_v12  ;;  %v2231_v46 = vsel %vm4394_vm2, %v2228_v12, %v2230_v24  ;;  %v3072_v31 = vpop.f32.mrb[36].mxu1  ;;  %v3355_v12 = vld [vmem:[%s3760_s13 + $0x18] sm:$0xff] }
 0x28e   : > { %v2366_v38 = vadd.f32 %v4165_v27, %v2343_v55  ;;  %v2273_v43 = vsel %vm3918_vm9, %v2229_v29, 0.0  ;;  %v2290_v44 = vadd.f32 %v2231_v46, %v2195_v45  ;;  %v2234_v47 = vrot.slane %v3072_v31, 1  ;;  %v2054_v49 = vpop.f32.mrb[37].mxu1  ;;  %v2201_v31 = vld [vmem:[%s4092_s10 + $0x40] sm:$0xff]  ;;  %vm4400_vm9 = vmmov %vm4392_vm0 }
 0x28f   : > { %v2289_v50 = vadd.f32 %v2273_v43, %v2194_v41  ;;  %v2232_v59 = vrot.slane %v2054_v49, 1  ;;  %v2200_v49 = vld [vmem:[%s4092_s10 + $0x38] sm:$0xff]  ;;  %vm4407_vm2 = vmmov %vm4393_vm1 }
 0x290   : > { %v2382_v30 = vadd.f32 %v3351_v51, %v2366_v38  ;;  %v2345_v13 = vmul.f32 %v4151_v15, %v2290_v44  ;;  %v3356_v51 = vld [vmem:[%s3760_s13 + $0x30] sm:$0xff] }
 0x291   : > { %v2344_v54 = vmul.f32 %v4151_v15, %v2289_v50  ;;  %v2233_v56 = vsel %vm4395_vm3, %v2230_v24, %v2232_v59  ;;  %v2235_v5 = vsel %vm4396_vm4, %v2232_v59, %v2234_v47  ;;  %v3075_v57 = vpop.f32.mrb[38].mxu1  ;;  %v3354_v24 = vld [vmem:[%s3760_s13 + $0x20] sm:$0xff] }
 0x292   : > { %v2398_v52 = vmax.f32 %v2382_v30, 0.0  ;;  %v2368_v0 = vadd.f32 %v4165_v27, %v2345_v13  ;;  %v2275_v63 = vsel %vm3937_vm10, %v2233_v56, 0.0  ;;  %v2292_v17 = vadd.f32 %v2235_v5, %v2197_v1  ;;  %v2064_v39 = vpop.f32.mrb[39].mxu1  ;;  %v3357_v56 = vld [vmem:[%s3760_s13 + $0x28] sm:$0xff]  ;;  %vm4401_vm10 = vmmov %vm4392_vm0 }
 0x293   : > { %v2367_v2 = vadd.f32 %v4165_v27, %v2344_v54  ;;  %v2291_v11 = vadd.f32 %v2275_v63, %v2196_v60  ;;  %v2238_v34 = vrot.slane %v3075_v57, 1  ;;  %v2236_v26 = vrot.slane %v2064_v39, 1  ;;  %v2203_v60 = vld [vmem:[%s4092_s10 + $0x50] sm:$0xff] }
 0x294   : > { %2414 = vst [vmem:[%s4092_s10] sm:$0xff] %v2398_v52  ;;  %v2384_v4 = vadd.f32 %v3352_v21, %v2368_v0  ;;  %v2347_v8 = vmul.f32 %v4151_v15, %v2292_v17 }
 0x295   : > { %v2383_v48 = vadd.f32 %v3353_v62, %v2367_v2  ;;  %v2346_v61 = vmul.f32 %v4151_v15, %v2291_v11  ;;  %v2237_v42 = vsel %vm4397_vm5, %v2234_v47, %v2236_v26  ;;  %v2239_v19 = vsel %vm4398_vm7, %v2236_v26, %v2238_v34  ;;  %v3078_v6 = vpop.f32.mrb[40].mxu1 }
 0x296   : > { %v2400_v40 = vmax.f32 %v2384_v4, 0.0  ;;  %v2370_v32 = vadd.f32 %v4165_v27, %v2347_v8  ;;  %v2277_v9 = vsel %vm3954_vm11, %v2237_v42, 0.0  ;;  %v2294_v14 = vadd.f32 %v2239_v19, %v2199_v36  ;;  %v2074_v18 = vpop.f32.mrb[41].mxu1  ;;  %vm4402_vm11 = vmmov %vm4392_vm0 }
 0x297   : > { %v2399_v20 = vmax.f32 %v2383_v48, 0.0  ;;  %v2369_v22 = vadd.f32 %v4165_v27, %v2346_v61  ;;  %v2293_v23 = vadd.f32 %v2277_v9, %v2198_v7  ;;  %v2242_v33 = vrot.slane %v3078_v6, 1  ;;  %v3358_v61 = vld [vmem:[%s3760_s13 + $0x40] sm:$0xff]  ;;  %v3359_v6 = vld [vmem:[%s3760_s13 + $0x38] sm:$0xff] }
 0x298   : > { %2416 = vst [vmem:[%s4092_s10 + $0x10] sm:$0xff] %v2400_v40  ;;  %v2386_v53 = vadd.f32 %v3354_v24, %v2370_v32  ;;  %v2349_v25 = vmul.f32 %v4151_v15, %v2294_v14  ;;  %v2240_v16 = vrot.slane %v2074_v18, 1  ;;  %v2205_v32 = vld [vmem:[%s4092_s10 + $0x60] sm:$0xff]  ;;  %vm4406_vm0 = vnez %v4385_v3 }
 0x299   : > { %2415 = vst [vmem:[%s4092_s10 + $0x8] sm:$0xff] %v2399_v20  ;;  %v2385_v58 = vadd.f32 %v3355_v12, %v2369_v22  ;;  %v2348_v55 = vmul.f32 %v4151_v15, %v2293_v23  ;;  %v3081_v45 = vpop.f32.mrb[42].mxu1  ;;  %v2204_v22 = vld [vmem:[%s4092_s10 + $0x58] sm:$0xff]  ;;  %v3360_v12 = vld [vmem:[%s3760_s13 + $0x50] sm:$0xff] }
 0x29a   : > { %v2402_v29 = vmax.f32 %v2386_v53, 0.0  ;;  %v2372_v46 = vadd.f32 %v4165_v27, %v2349_v25  ;;  %v2241_v38 = vsel %vm4399_vm8, %v2238_v34, %v2240_v16  ;;  %v2243_v41 = vsel %vm4400_vm9, %v2240_v16, %v2242_v33  ;;  %v2084_v43 = vpop.f32.mrb[43].mxu1  ;;  %v2202_v34 = vld [vmem:[%s4092_s10 + $0x48] sm:$0xff] }
 0x29b   : > { %v2401_v44 = vmax.f32 %v2385_v58, 0.0  ;;  %v2371_v47 = vadd.f32 %v4165_v27, %v2348_v55  ;;  %v2279_v50 = vsel %vm3973_vm12, %v2241_v38, 0.0  ;;  %v2296_v59 = vadd.f32 %v2243_v41, %v2201_v31  ;;  %v2208_v31 = vld [vmem:[%s4092_s10 + $0x78] sm:$0x7f] }
 0x29c   : > { %2418 = vst [vmem:[%s4092_s10 + $0x20] sm:$0xff] %v2402_v29  ;;  %v2388_v30 = vadd.f32 %v3356_v51, %v2372_v46  ;;  %v2295_v13 = vadd.f32 %v2279_v50, %v2200_v49  ;;  %v2246_v54 = vrot.slane %v3081_v45, 1  ;;  %v2244_v1 = vrot.slane %v2084_v43, 1  ;;  %v3361_v29 = vld [vmem:[%s3760_s13 + $0x48] sm:$0xff]  ;;  %v2207_v51 = vld [vmem:[%s4092_s10 + $0x70] sm:$0xff] }
 0x29d   : > { %2417 = vst [vmem:[%s4092_s10 + $0x18] sm:$0xff] %v2401_v44  ;;  %v2387_v5 = vadd.f32 %v3357_v56, %v2371_v47  ;;  %v2351_v57 = vmul.f32 %v4151_v15, %v2296_v59  ;;  %v3084_v52 = vpop.f32.mrb[44].mxu1  ;;  %vm4403_vm12 = vnez %v4383_v10  ;;  %v2206_v59 = vld [vmem:[%s4092_s10 + $0x68] sm:$0xff] }
 0x29e   : > { %v2404_v0 = vmax.f32 %v2388_v30, 0.0  ;;  %v2350_v28 = vmul.f32 %v4151_v15, %v2295_v13  ;;  %v2245_v63 = vsel %vm4401_vm10, %v2242_v33, %v2244_v1  ;;  %v2247_v17 = vsel %vm4402_vm11, %v2244_v1, %v2246_v54  ;;  %v2094_v39 = vpop.f32.mrb[45].mxu1  ;;  %v3362_v13 = vld [vmem:[%s3760_s13 + $0x60] sm:$0xff] }
 0x29f   : > { %v2403_v2 = vmax.f32 %v2387_v5, 0.0  ;;  %v2374_v11 = vadd.f32 %v4165_v27, %v2351_v57  ;;  %v2281_v26 = vsel %vm4403_vm12, %v2245_v63, 0.0  ;;  %v2298_v21 = vadd.f32 %v2247_v17, %v2203_v60  ;;  %v3363_v5 = vld [vmem:[%s3760_s13 + $0x58] sm:$0xff]  ;;  %v3364_v17 = vld [vmem:[%s3760_s13 + $0x68] sm:$0xff] }
 0x2a0   : > { %2420 = vst [vmem:[%s4092_s10 + $0x30] sm:$0xff] %v2404_v0  ;;  %v2373_v4 = vadd.f32 %v4165_v27, %v2350_v28  ;;  %v2297_v8 = vadd.f32 %v2281_v26, %v2202_v34  ;;  %v2250_v62 = vrot.slane %v3084_v52, 1  ;;  %v2248_v48 = vrot.slane %v2094_v39, 1 }
 0x2a1   : > { %2419 = vst [vmem:[%s4092_s10 + $0x28] sm:$0xff] %v2403_v2  ;;  %v2390_v36 = vadd.f32 %v3358_v61, %v2374_v11  ;;  %v2353_v42 = vmul.f32 %v4151_v15, %v2298_v21  ;;  %v3087_v19 = vpop.f32.mrb[46].mxu1  ;;  %v3365_v2 = vld [vmem:[%s3760_s13 + $0x70] sm:$0xff] }
 0x2a2   : > { %v2389_v40 = vadd.f32 %v3359_v6, %v2373_v4  ;;  %v2352_v10 = vmul.f32 %v4151_v15, %v2297_v8  ;;  %v2249_v7 = vsel %vm4404_vm13, %v2246_v54, %v2248_v48  ;;  %v2251_v9 = vsel %vm4405_vm14, %v2248_v48, %v2250_v62  ;;  %v2104_v14 = vpop.f32.mrb[47].mxu1 }
 0x2a3   : > { %v2406_v18 = vmax.f32 %v2390_v36, 0.0  ;;  %v2376_v20 = vadd.f32 %v4165_v27, %v2353_v42  ;;  %v2283_v23 = vsel %vm4406_vm0, %v2249_v7, 0.0  ;;  %v2300_v33 = vadd.f32 %v2251_v9, %v2205_v32 }
 0x2a4   : > { %v2405_v24 = vmax.f32 %v2389_v40, 0.0  ;;  %v2375_v53 = vadd.f32 %v4165_v27, %v2352_v10  ;;  %v2299_v25 = vadd.f32 %v2283_v23, %v2204_v22  ;;  %v2254_v16 = vrot.slane %v3087_v19, 1 }
 0x2a5   : > { %2422 = vst [vmem:[%s4092_s10 + $0x40] sm:$0xff] %v2406_v18  ;;  %v2392_v58 = vadd.f32 %v3360_v12, %v2376_v20  ;;  %v2355_v55 = vmul.f32 %v4151_v15, %v2300_v33  ;;  %v2252_v45 = vrot.slane %v2104_v14, 1 }
 0x2a6   : > { %2421 = vst [vmem:[%s4092_s10 + $0x38] sm:$0xff] %v2405_v24  ;;  %v2391_v3 = vadd.f32 %v3361_v29, %v2375_v53  ;;  %v2354_v46 = vmul.f32 %v4151_v15, %v2299_v25  ;;  %v2287_v38 = vsel %vm4034_vm15, %v2254_v16, 0.0 }
 0x2a7   : > { %v2408_v41 = vmax.f32 %v2392_v58, 0.0  ;;  %v2378_v43 = vadd.f32 %v4165_v27, %v2355_v55  ;;  %v2303_v44 = vadd.f32 %v2287_v38, %v2208_v31  ;;  %v2253_v47 = vsel %vm4393_vm1, %v2250_v62, %v2252_v45  ;;  %v3366_v62 = vld [vmem:[%s3760_s13 + $0x78] sm:$0xff]  ;;  %s3457_s13 = sshll.u32 %s3530_s28, 4  ;;  %s3458_s13 = int_to_ptr.vmem [resolvable:$false] %s3457_s13 }
 0x2a8   : > { %v2407_v49 = vmax.f32 %v2391_v3, 0.0  ;;  %v2377_v50 = vadd.f32 %v4165_v27, %v2354_v46  ;;  %v2255_v30 = vsel %vm4407_vm2, %v2252_v45, %v2254_v16  ;;  %v2285_v37 = vsel %vm4055_vm6, %v2253_v47, 0.0  ;;  %s3459_s15 = scalar_lea.vmem %s3458_s13, 4096  ;;  %p3460_p7 = scmp.lt.s32.totalorder %s4287_s22, %s3458_s13 }
 0x2a9   : > { %2424 = vst [vmem:[%s4092_s10 + $0x50] sm:$0xff] %v2408_v41  ;;  %v2394_v54 = vadd.f32 %v3362_v13, %v2378_v43  ;;  %2319 = vst [vmem:[%s4092_s10 + $0x78] sm:$0x7f] %v2303_v44  ;;  %v2301_v1 = vadd.f32 %v2285_v37, %v2206_v59  ;;  %v2302_v56 = vadd.f32 %v2255_v30, %v2207_v51  ;;  %p3461_p9 = scmp.lt.s32.totalorder %s3459_s15, %s3453_s11 }
 0x2aa   : > { %2423 = vst [vmem:[%s4092_s10 + $0x48] sm:$0xff] %v2407_v49  ;;  %v2393_v57 = vadd.f32 %v3363_v5, %v2377_v50 }
 0x2ab   : > { %v2410_v52 = vmax.f32 %v2394_v54, 0.0  ;;  %v2356_v0 = vmul.f32 %v4151_v15, %v2301_v1  ;;  %v2357_v35 = vmul.f32 %v4151_v15, %v2302_v56  ;;  %p3462_p12 = por %p3461_p9, %p3460_p7 }
 0x2ac   : > { %v2409_v28 = vmax.f32 %v2393_v57, 0.0 }
 0x2ad   : > { %2426 = vst [vmem:[%s4092_s10 + $0x60] sm:$0xff] %v2410_v52  ;;  %v2379_v60 = vadd.f32 %v4165_v27, %v2356_v0  ;;  %v2380_v63 = vadd.f32 %v4165_v27, %v2357_v35  ;;  %p3463_p1 = pnand %p3462_p12, %p3456_p3 }
 0x2ae   : > { %2425 = vst [vmem:[%s4092_s10 + $0x58] sm:$0xff] %v2409_v28 }
 0x2af   : > { %v2395_v39 = vadd.f32 %v3364_v17, %v2379_v60  ;;  %v2396_v11 = vadd.f32 %v3365_v2, %v2380_v63 }
 0x2b0   : > { %v2335_v34 = vld [vmem:[%s4092_s10 + $0x78] sm:$0xff] }
 0x2b1   : > { %v2358_v26 = vmul.f32 %v4151_v15, %v2335_v34  ;;  %v2411_v21 = vmax.f32 %v2395_v39, 0.0  ;;  %v2412_v4 = vmax.f32 %v2396_v11, 0.0 }
 0x2b3   : > { %v2381_v8 = vadd.f32 %v4165_v27, %v2358_v26  ;;  %2427 = vst [vmem:[%s4092_s10 + $0x68] sm:$0xff] %v2411_v21  ;;  %2428 = vst [vmem:[%s4092_s10 + $0x70] sm:$0xff] %v2412_v4 }
 0x2b5   : > { %v2397_v48 = vadd.f32 %v3366_v62, %v2381_v8 }
 0x2b7   : > { %v2413_v15 = vmax.f32 %v2397_v48, 0.0 }
 0x2b9   : > { %2429 = vst [vmem:[%s4092_s10 + $0x78] sm:$0xff] %v2413_v15 }
 0x2ba   : > { %3466 = shalt.err (!%p3463_p1)
}
 0x2bb   : > { %s3467_s10 = scalar_lea.hbm %s4285_s9, 2048  ;;  %s3471_s21 = scalar_lea.hbm %s4339_s7, 4096 }
 0x2bc   : > { %p3468_p13 = scmp.ne.s32.totalorder %s4285_s9, %s3467_s10  ;;  %p3472_p4 = scmp.lt.u32.totalorder %s4285_s9, %s4339_s7 }
 0x2bd   : > { %p3473_p5 = scmp.lt.u32.totalorder %s3471_s21, %s3467_s10  ;;  %p3475_p11 = scmp.lt.u32.totalorder %s3467_s10, %s4285_s9 }
 0x2be   : > { %p3469_p6 = pnand %p3468_p13, %p4408_p0 }
 0x2bf   : > { %p3474_p8 = por %p3473_p5, %p3472_p4 }
 0x2c0   : > { %p3470_p10 = pneg %p3469_p6 }
 0x2c1   : > { %p3476_p2 = por %p3475_p11, %p3474_p8 }
 0x2c3   : > { %p3477_p3 = pnand %p3476_p2, %p3470_p10 }
 0x2c5   : > { %3480 = shalt.err (!%p3477_p3)
}
 0x2c6   : > { %s3531_s30 = smov 128   ;;  %s3532_s11 = smov 8  }
 0x2c7   : > { %3290 = dma.vmem_to_hbm [thread:$0]  (%p4408_p0), %s4287_s22, 2048, %s4285_s9, %s2431_s29, %s3531_s30, %s3531_s30, %s3532_s11  }
 0x2c8 PF: > { %s2459_s28 = sand.u32 1, %s3511_s24   ;;  %p4409_p7 = scmp.ne.s32.totalorder %s4348_s8, 0 }
 0x2c9   : > { %p4410_p9 = scmp.ge.s32.totalorder %s3523_s27, 2  ;;  %s2460_s13 = scalar_lea.sflag [#allocation5], %s2459_s28 }
 0x2cb   : > { %p3304_p12 = pnand %p4410_p9, %p4409_p7 }
 0x2cd   : > { %3506 = dma.done.wait (!%p3304_p12), %s2460_s13, 2048  }
 0x2ce   : > { %3508 = vsyncadd (!%p3304_p12), %s2460_s13, 4294965248  ;;  %p21_p1 = scmp.ge.s32.totalorder %s3689_s12, 4   ;;  %s4411_s24 = smov %s3515_s25 }
 0x2cf   : > { %s4412_s25 = smov %s3519_s26  ;;  %s4413_s26 = smov %s3705_s17 }
 0x2d0   : > { %s4414_s27 = smov %s3689_s12  ;;  %23 = sbr.rel (!%p21_p1) target bundleno = 6 (0x6), region = 105 }
 0x2d7   :  { %2465 = vsyncpa [#allocation4], 1 }
 0x2d8   :  { %2467 = vsyncpa [#allocation4 + $0x1], 1 }
 0x2d9   :  { %2468 = vsyncpa [#allocation7], 1 }
 0x2da   :  { %2469 = vsyncpa [#allocation5], 1 }
 0x2db   :  { %2471 = vsyncpa [#allocation5 + $0x1], 1 }

</bundles_post_ra>
